<compile_context>
chip_gen: v5e
topology: v5e:2x2
jax: 0.10.0
libtpu: 0.0.40
codegen_flags: <defaults>
</compile_context>

<pallas_src>
import functools

import jax
import jax.numpy as jnp
from jax import lax
from jax.experimental import pallas as pl
from jax.experimental.pallas import tpu as pltpu


# ----------------------------------------------------------------------------
# helpers
# ----------------------------------------------------------------------------
def _round_up(x, m):
    return ((x + m - 1) // m) * m


@functools.lru_cache(maxsize=1)
def _is_v7():
    try:
        kind = jax.devices()[0].device_kind.lower()
    except Exception:
        return False
    return ("v7" in kind) or ("7x" in kind)


def _weight_tile_budget_bytes():
    # v7x: 64 MiB VMEM/TC -> keep double-buffered weight tiles <= ~26 MiB.
    # v5e/v6e: 128 MiB -> allow up to ~52 MiB double-buffered.
    return (13 << 20) if _is_v7() else (26 << 20)


def _vmem_limit(block_bytes):
    # block_bytes already includes double-buffering once; add headroom only.
    cap = (48 << 20) if _is_v7() else (100 << 20)
    return int(min(max(block_bytes + (4 << 20), 16 << 20), cap))


def _n_axis_semantics(grid_n):
    # Plain "parallel" vs "arbitrary" barely changes codegen; only CORE_PARALLEL
    # actually shards the N axis across v7x's two TensorCores.
    if _is_v7() and grid_n >= 2:
        return (pltpu.CORE_PARALLEL,)
    return ("parallel",)


def _pick_tn(K, N, max_tn):
    """Largest multiple-of-128 divisor of N (<= max_tn) whose (K, tn) bf16
    weight tile fits the per-generation VMEM budget."""
    budget = _weight_tile_budget_bytes()
    best = 128
    t = 128
    while t <= min(N, max_tn):
        if N % t == 0 and K * t * 2 <= budget:
            best = t
        t += 128
    return best


# ----------------------------------------------------------------------------
# Linear + ReLU: grid over N tiles only (full K per step), bf16 in / bf16 out,
# f32 accumulate + bias + ReLU.  No accumulator scratch, no epilogue pl.when.
# ----------------------------------------------------------------------------
def _linear_relu_kernel(x_ref, w_ref, b_ref, o_ref):
    acc = jnp.dot(x_ref[...], w_ref[...], preferred_element_type=jnp.float32)
    o_ref[...] = jnp.maximum(acc + b_ref[...], 0.0).astype(o_ref.dtype)


def _linear_relu(x, w, b, *, max_tn=2560):
    """y = ReLU(x @ W + b). x: (Bp, K) bf16, W: (K, N) bf16, b: (1, N) f32."""
    Bp, K = x.shape
    Kw, N = w.shape
    assert K == Kw, (K, Kw)
    tn = _pick_tn(K, N, max_tn)
    grid_n = N // tn

    block_bytes = (
        2 * (Bp * K * 2)      # activation block (bf16)
        + 2 * (K * tn * 2)    # streamed weight tiles (bf16, double-buffered)
        + 2 * (tn * 4)        # bias tiles (f32)
        + 2 * (Bp * tn * 2)   # output tiles (bf16)
    )

    return pl.pallas_call(
        _linear_relu_kernel,
        out_shape=jax.ShapeDtypeStruct((Bp, N), jnp.bfloat16),
        grid_spec=pltpu.PrefetchScalarGridSpec(
            num_scalar_prefetch=0,
            grid=(grid_n,),
            in_specs=[
                pl.BlockSpec((Bp, K), lambda j: (0, 0)),   # activations (resident)
                pl.BlockSpec((K, tn), lambda j: (0, j)),   # weight tile stream
                pl.BlockSpec((1, tn), lambda j: (0, j)),   # bias tile
            ],
            out_specs=pl.BlockSpec((Bp, tn), lambda j: (0, j)),
        ),
        compiler_params=pltpu.CompilerParams(
            dimension_semantics=_n_axis_semantics(grid_n),
            vmem_limit_bytes=_vmem_limit(block_bytes),
        ),
    )(x, w, b)


# ----------------------------------------------------------------------------
# Fused tail: Linear(K,N)+ReLU with the final Linear(N,1)+ReLU folded into the
# epilogue as a lane reduction accumulated into an output-resident (Bp,1) block.
# ----------------------------------------------------------------------------
def _fused_tail_kernel(x_ref, w_ref, b_ref, wrow_ref, blast_ref, o_ref):
    j = pl.program_id(0)
    h = jnp.dot(x_ref[...], w_ref[...], preferred_element_type=jnp.float32)
    h = jnp.maximum(h + b_ref[...], 0.0)                              # (Bp, tn) f32
    # N=1 final layer: VPU multiply + XLU lane reduce instead of an MXU push.
    partial = jnp.sum(h * wrow_ref[...].astype(jnp.float32), axis=-1,
                      keepdims=True)                                  # (Bp, 1)

    @pl.when(j == 0)
    def _():
        o_ref[...] = jnp.zeros_like(o_ref)

    o_ref[...] += partial

    @pl.when(j == pl.num_programs(0) - 1)
    def _():
        o_ref[...] = jnp.maximum(o_ref[...] + blast_ref[...], 0.0)


def _fused_tail(x, w, b, w_row, b_last, *, max_tn=2560):
    """out = ReLU(ReLU(x @ W + b) @ w_row.T + b_last), shape (Bp, 1) f32."""
    Bp, K = x.shape
    Kw, N = w.shape
    assert K == Kw and w_row.shape == (1, N), (x.shape, w.shape, w_row.shape)
    tn = _pick_tn(K, N, max_tn)
    grid_n = N // tn

    block_bytes = (
        2 * (Bp * K * 2)
        + 2 * (K * tn * 2)
        + 2 * (tn * 4)
        + 2 * (tn * 2)
        + Bp * 4 + 4
    )

    return pl.pallas_call(
        _fused_tail_kernel,
        out_shape=jax.ShapeDtypeStruct((Bp, 1), jnp.float32),
        grid_spec=pltpu.PrefetchScalarGridSpec(
            num_scalar_prefetch=0,
            grid=(grid_n,),
            in_specs=[
                pl.BlockSpec((Bp, K), lambda j: (0, 0)),   # activations (resident)
                pl.BlockSpec((K, tn), lambda j: (0, j)),   # layer-4 weight tiles
                pl.BlockSpec((1, tn), lambda j: (0, j)),   # layer-4 bias tile
                pl.BlockSpec((1, tn), lambda j: (0, j)),   # layer-5 weight row tile
                pl.BlockSpec((1, 1), lambda j: (0, 0)),    # layer-5 bias
            ],
            out_specs=pl.BlockSpec((Bp, 1), lambda j: (0, 0)),
        ),
        compiler_params=pltpu.CompilerParams(
            # output block is accumulated across j -> reduction axis.
            dimension_semantics=("arbitrary",),
            vmem_limit_bytes=_vmem_limit(block_bytes),
        ),
    )(x, w, b, w_row, b_last)


# ----------------------------------------------------------------------------
# Parameter packing: zero-pad feature dims to 128, cast weights to bf16.
# ----------------------------------------------------------------------------
def pack_params(params):
    """params: list of (W (D_in, D_out) f32, b (1, D_out) f32) with y = x@W + b
    (PyTorch layout transposed).  Returns layers 1..n-1 as padded
    (W_bf16, b_f32); the final Linear(K, 1) is packed as a (1, K_pad) bf16 row
    plus a (1, 1) f32 bias for the fused-tail kernel."""
    packed = []
    n_layers = len(params)
    for i, (w, b) in enumerate(params):
        w = jnp.asarray(w, jnp.float32)
        d_in, d_out = w.shape
        b = jnp.asarray(b, jnp.float32).reshape(1, d_out)
        p_in = _round_up(d_in, 128)
        last = i == n_layers - 1
        if last:
            assert d_out == 1, "final layer of NetWithoutldlAndCNN has out_num=1"
            w_p = jnp.zeros((p_in, 1), jnp.float32).at[:d_in, :].set(w)
            packed.append((w_p.T.astype(jnp.bfloat16), b))           # (1, p_in), (1, 1)
        else:
            p_out = _round_up(d_out, 128)
            w_p = jnp.zeros((p_in, p_out), jnp.float32).at[:d_in, :d_out].set(w)
            b_p = jnp.zeros((1, p_out), jnp.float32).at[:, :d_out].set(b)
            packed.append((w_p.astype(jnp.bfloat16), b_p))
    return packed


@functools.partial(jax.jit, static_argnames=("max_tn",))
def net_without_ldl_and_cnn_forward(x, packed_params, *, max_tn=2560):
    """x: (B, ...) -> flattened; packed_params from pack_params()."""
    B = x.shape[0]
    h = x.reshape(B, -1).astype(jnp.float32)           # x.view(x.size(0), -1)
    p_in = packed_params[0][0].shape[0]
    assert h.shape[1] <= p_in, (h.shape, p_in)
    Bp = _round_up(max(B, 8), 8)                       # fill full sublanes
    h = jnp.pad(h, ((0, Bp - B), (0, p_in - h.shape[1])))
    h = h.astype(jnp.bfloat16)                         # bf16 activations off DMA
    for w, b in packed_params[:-2]:                    # layers 1..3
        h = _linear_relu(h, w, b, max_tn=max_tn)
    (w4, b4), (w5_row, b5) = packed_params[-2], packed_params[-1]
    out = _fused_tail(h, w4, b4, w5_row, b5, max_tn=max_tn)   # layers 4+5 fused
    return out[:B]


# ----------------------------------------------------------------------------
# Init + pure-JAX reference
# ----------------------------------------------------------------------------
def init_params(key, dims):
    """PyTorch-Linear-style uniform(-1/sqrt(fan_in), 1/sqrt(fan_in)) init.
    Returns list of (W, b) with W shaped (D_in, D_out)."""
    params = []
    for i in range(len(dims) - 1):
        d_in, d_out = dims[i], dims[i + 1]
        key, kw, kb = jax.random.split(key, 3)
        bound = 1.0 / jnp.sqrt(jnp.float32(d_in))
        w = jax.random.uniform(kw, (d_in, d_out), jnp.float32, -bound, bound)
        b = jax.random.uniform(kb, (1, d_out), jnp.float32, -bound, bound)
        params.append((w, b))
    return params


def _reference_forward(x, params):
    """Mirrors the kernel numerics: bf16 matmul operands everywhere except the
    f32 hidden of the fused final layer; f32 accumulate / bias / ReLU; bf16
    rounding of activations stored between pallas_calls."""
    h = x.reshape(x.shape[0], -1).astype(jnp.float32)
    h = h.astype(jnp.bfloat16).astype(jnp.float32)
    n = len(params)
    for i, (w, b) in enumerate(params):
        w_f = jnp.asarray(w, jnp.float32).astype(jnp.bfloat16).astype(jnp.float32)
        b_f = jnp.asarray(b, jnp.float32).reshape(1, -1)
        h = jnp.maximum(
            jnp.matmul(h, w_f, precision=lax.Precision.HIGHEST) + b_f, 0.0)
        if i < n - 2:
            h = h.astype(jnp.bfloat16).astype(jnp.float32)
    return h


if __name__ == "__main__":
    key = jax.random.PRNGKey(0)

    # Scaled-down analog of the real widths 341 -> 5000 -> 1000 -> 5000 -> 2500 -> 1.
    # Non-128-multiple dims chosen on purpose to exercise the zero-padding path.
    B, C, H, W = 2, 1, 11, 31            # flattens to 341 features (real cnn_out_size)
    dims = (C * H * W, 500, 200, 500, 250, 1)

    key, kx = jax.random.split(key)
    x = jax.random.normal(kx, (B, C, H, W), jnp.float32)
    params = init_params(key, dims)
    packed = pack_params(params)
    ref = _reference_forward(x, params)

    # Single-tile-per-layer path (full N fits one tile at these small widths).
    out = jax.block_until_ready(net_without_ldl_and_cnn_forward(x, packed))
    assert out.shape == (B, 1), out.shape
    assert jnp.allclose(out, ref, atol=2e-3, rtol=2e-3), "mismatch vs reference"

    # Force multi-tile N grids to exercise the streamed-weight path and the
    # fused-epilogue accumulation that the real 5000/2500-wide layers take.
    out_tiled = jax.block_until_ready(
        net_without_ldl_and_cnn_forward(x, packed, max_tn=128))
    assert jnp.allclose(out_tiled, ref, atol=2e-3, rtol=2e-3), "tiled mismatch"

    print("KERNEL_OK")
</pallas_src>

<mosaic_0001>
module attributes {stable_mosaic.version = 11 : i64} {
  func.func @_linear_relu_kernel(%arg0: i32, %arg1: memref<8x384xbf16, #tpu.memory_space<vmem>>, %arg2: memref<384x512xbf16, #tpu.memory_space<vmem>>, %arg3: memref<1x512xf32, #tpu.memory_space<vmem>>, %arg4: memref<8x512xbf16, #tpu.memory_space<vmem>>) attributes {dimension_semantics = [#tpu.dimension_semantics<parallel>], iteration_bounds = array<i64: 1>, scalar_prefetch = 0 : i64, scratch_operands = 0 : i64, tpu.core_type = #tpu.core_type<tc>, window_params = [{pipeline_mode = #tpu.pipeline_mode<synchronous>, transform_indices = @transform_0, window_bounds = array<i64: 8, 384>}, {transform_indices = @transform_1, window_bounds = array<i64: 384, 512>}, {transform_indices = @transform_2, window_bounds = array<i64: 1, 512>}, {transform_indices = @transform_3, window_bounds = array<i64: 8, 512>}]} {
    %c0 = arith.constant 0 : index
    %c0_0 = arith.constant 0 : index
    %0 = vector.load %arg1[%c0, %c0_0] : memref<8x384xbf16, #tpu.memory_space<vmem>>, vector<8x384xbf16>
    %c0_1 = arith.constant 0 : index
    %c0_2 = arith.constant 0 : index
    %1 = vector.load %arg2[%c0_1, %c0_2] : memref<384x512xbf16, #tpu.memory_space<vmem>>, vector<384x512xbf16>
    %cst = arith.constant dense<0.000000e+00> : vector<8x512xf32>
    %2 = tpu.matmul %0, %1, %cst {dimension_numbers = #tpu.dot_dimension_numbers<[1], [0], [0], [1], [0, 0, 1, 1], [], []>} : vector<8x384xbf16>, vector<384x512xbf16>, vector<8x512xf32> -> vector<8x512xf32>
    %c0_3 = arith.constant 0 : index
    %c0_4 = arith.constant 0 : index
    %3 = vector.load %arg3[%c0_3, %c0_4] : memref<1x512xf32, #tpu.memory_space<vmem>>, vector<1x512xf32>
    %4 = vector.broadcast %3 : vector<1x512xf32> to vector<8x512xf32>
    %5 = arith.addf %2, %4 : vector<8x512xf32>
    %cst_5 = arith.constant 0.000000e+00 : f32
    %6 = vector.broadcast %cst_5 : f32 to vector<8x512xf32>
    %7 = arith.maximumf %5, %6 : vector<8x512xf32>
    %8 = arith.truncf %7 : vector<8x512xf32> to vector<8x512xbf16>
    %c0_6 = arith.constant 0 : index
    %c0_7 = arith.constant 0 : index
    %9 = vector.load %arg4[%c0_6, %c0_7] : memref<8x512xbf16, #tpu.memory_space<vmem>>, vector<8x512xbf16>
    tpu.vector_store %arg4[%c0_6, %c0_7], %8 {strides = array<i32>} : memref<8x512xbf16, #tpu.memory_space<vmem>>, vector<8x512xbf16>,
    return
  }
  func.func @transform_0(%arg0: i32) -> (i32, i32) {
    %c0_i32 = arith.constant 0 : i32
    %c0_i32_0 = arith.constant 0 : i32
    %c0_i32_1 = arith.constant 0 : i32
    return %c0_i32, %c0_i32_0 : i32, i32
  }
  func.func @transform_1(%arg0: i32) -> (i32, i32) {
    %c0_i32 = arith.constant 0 : i32
    %c0_i32_0 = arith.constant 0 : i32
    return %c0_i32, %arg0 : i32, i32
  }
  func.func @transform_2(%arg0: i32) -> (i32, i32) {
    %c0_i32 = arith.constant 0 : i32
    %c0_i32_0 = arith.constant 0 : i32
    return %c0_i32, %arg0 : i32, i32
  }
  func.func @transform_3(%arg0: i32) -> (i32, i32) {
    %c0_i32 = arith.constant 0 : i32
    %c0_i32_0 = arith.constant 0 : i32
    return %c0_i32, %arg0 : i32, i32
  }
}

module attributes {stable_mosaic.version = 11 : i64} {
  func.func @_linear_relu_kernel(%arg0: i32, %arg1: memref<8x256xbf16, #tpu.memory_space<vmem>>, %arg2: memref<256x512xbf16, #tpu.memory_space<vmem>>, %arg3: memref<1x512xf32, #tpu.memory_space<vmem>>, %arg4: memref<8x512xbf16, #tpu.memory_space<vmem>>) attributes {dimension_semantics = [#tpu.dimension_semantics<parallel>], iteration_bounds = array<i64: 1>, scalar_prefetch = 0 : i64, scratch_operands = 0 : i64, tpu.core_type = #tpu.core_type<tc>, window_params = [{pipeline_mode = #tpu.pipeline_mode<synchronous>, transform_indices = @transform_0, window_bounds = array<i64: 8, 256>}, {transform_indices = @transform_1, window_bounds = array<i64: 256, 512>}, {transform_indices = @transform_2, window_bounds = array<i64: 1, 512>}, {transform_indices = @transform_3, window_bounds = array<i64: 8, 512>}]} {
    %c0 = arith.constant 0 : index
    %c0_0 = arith.constant 0 : index
    %0 = vector.load %arg1[%c0, %c0_0] : memref<8x256xbf16, #tpu.memory_space<vmem>>, vector<8x256xbf16>
    %c0_1 = arith.constant 0 : index
    %c0_2 = arith.constant 0 : index
    %1 = vector.load %arg2[%c0_1, %c0_2] : memref<256x512xbf16, #tpu.memory_space<vmem>>, vector<256x512xbf16>
    %cst = arith.constant dense<0.000000e+00> : vector<8x512xf32>
    %2 = tpu.matmul %0, %1, %cst {dimension_numbers = #tpu.dot_dimension_numbers<[1], [0], [0], [1], [0, 0, 1, 1], [], []>} : vector<8x256xbf16>, vector<256x512xbf16>, vector<8x512xf32> -> vector<8x512xf32>
    %c0_3 = arith.constant 0 : index
    %c0_4 = arith.constant 0 : index
    %3 = vector.load %arg3[%c0_3, %c0_4] : memref<1x512xf32, #tpu.memory_space<vmem>>, vector<1x512xf32>
    %4 = vector.broadcast %3 : vector<1x512xf32> to vector<8x512xf32>
    %5 = arith.addf %2, %4 : vector<8x512xf32>
    %cst_5 = arith.constant 0.000000e+00 : f32
    %6 = vector.broadcast %cst_5 : f32 to vector<8x512xf32>
    %7 = arith.maximumf %5, %6 : vector<8x512xf32>
    %8 = arith.truncf %7 : vector<8x512xf32> to vector<8x512xbf16>
    %c0_6 = arith.constant 0 : index
    %c0_7 = arith.constant 0 : index
    %9 = vector.load %arg4[%c0_6, %c0_7] : memref<8x512xbf16, #tpu.memory_space<vmem>>, vector<8x512xbf16>
    tpu.vector_store %arg4[%c0_6, %c0_7], %8 {strides = array<i32>} : memref<8x512xbf16, #tpu.memory_space<vmem>>, vector<8x512xbf16>,
    return
  }
  func.func @transform_0(%arg0: i32) -> (i32, i32) {
    %c0_i32 = arith.constant 0 : i32
    %c0_i32_0 = arith.constant 0 : i32
    %c0_i32_1 = arith.constant 0 : i32
    return %c0_i32, %c0_i32_0 : i32, i32
  }
  func.func @transform_1(%arg0: i32) -> (i32, i32) {
    %c0_i32 = arith.constant 0 : i32
    %c0_i32_0 = arith.constant 0 : i32
    return %c0_i32, %arg0 : i32, i32
  }
  func.func @transform_2(%arg0: i32) -> (i32, i32) {
    %c0_i32 = arith.constant 0 : i32
    %c0_i32_0 = arith.constant 0 : i32
    return %c0_i32, %arg0 : i32, i32
  }
  func.func @transform_3(%arg0: i32) -> (i32, i32) {
    %c0_i32 = arith.constant 0 : i32
    %c0_i32_0 = arith.constant 0 : i32
    return %c0_i32, %arg0 : i32, i32
  }
}

module attributes {stable_mosaic.version = 11 : i64} {
  func.func @_linear_relu_kernel(%arg0: i32, %arg1: memref<8x512xbf16, #tpu.memory_space<vmem>>, %arg2: memref<512x256xbf16, #tpu.memory_space<vmem>>, %arg3: memref<1x256xf32, #tpu.memory_space<vmem>>, %arg4: memref<8x256xbf16, #tpu.memory_space<vmem>>) attributes {dimension_semantics = [#tpu.dimension_semantics<parallel>], iteration_bounds = array<i64: 1>, scalar_prefetch = 0 : i64, scratch_operands = 0 : i64, tpu.core_type = #tpu.core_type<tc>, window_params = [{pipeline_mode = #tpu.pipeline_mode<synchronous>, transform_indices = @transform_0, window_bounds = array<i64: 8, 512>}, {transform_indices = @transform_1, window_bounds = array<i64: 512, 256>}, {transform_indices = @transform_2, window_bounds = array<i64: 1, 256>}, {transform_indices = @transform_3, window_bounds = array<i64: 8, 256>}]} {
    %c0 = arith.constant 0 : index
    %c0_0 = arith.constant 0 : index
    %0 = vector.load %arg1[%c0, %c0_0] : memref<8x512xbf16, #tpu.memory_space<vmem>>, vector<8x512xbf16>
    %c0_1 = arith.constant 0 : index
    %c0_2 = arith.constant 0 : index
    %1 = vector.load %arg2[%c0_1, %c0_2] : memref<512x256xbf16, #tpu.memory_space<vmem>>, vector<512x256xbf16>
    %cst = arith.constant dense<0.000000e+00> : vector<8x256xf32>
    %2 = tpu.matmul %0, %1, %cst {dimension_numbers = #tpu.dot_dimension_numbers<[1], [0], [0], [1], [0, 0, 1, 1], [], []>} : vector<8x512xbf16>, vector<512x256xbf16>, vector<8x256xf32> -> vector<8x256xf32>
    %c0_3 = arith.constant 0 : index
    %c0_4 = arith.constant 0 : index
    %3 = vector.load %arg3[%c0_3, %c0_4] : memref<1x256xf32, #tpu.memory_space<vmem>>, vector<1x256xf32>
    %4 = vector.broadcast %3 : vector<1x256xf32> to vector<8x256xf32>
    %5 = arith.addf %2, %4 : vector<8x256xf32>
    %cst_5 = arith.constant 0.000000e+00 : f32
    %6 = vector.broadcast %cst_5 : f32 to vector<8x256xf32>
    %7 = arith.maximumf %5, %6 : vector<8x256xf32>
    %8 = arith.truncf %7 : vector<8x256xf32> to vector<8x256xbf16>
    %c0_6 = arith.constant 0 : index
    %c0_7 = arith.constant 0 : index
    %9 = vector.load %arg4[%c0_6, %c0_7] : memref<8x256xbf16, #tpu.memory_space<vmem>>, vector<8x256xbf16>
    tpu.vector_store %arg4[%c0_6, %c0_7], %8 {strides = array<i32>} : memref<8x256xbf16, #tpu.memory_space<vmem>>, vector<8x256xbf16>,
    return
  }
  func.func @transform_0(%arg0: i32) -> (i32, i32) {
    %c0_i32 = arith.constant 0 : i32
    %c0_i32_0 = arith.constant 0 : i32
    %c0_i32_1 = arith.constant 0 : i32
    return %c0_i32, %c0_i32_0 : i32, i32
  }
  func.func @transform_1(%arg0: i32) -> (i32, i32) {
    %c0_i32 = arith.constant 0 : i32
    %c0_i32_0 = arith.constant 0 : i32
    return %c0_i32, %arg0 : i32, i32
  }
  func.func @transform_2(%arg0: i32) -> (i32, i32) {
    %c0_i32 = arith.constant 0 : i32
    %c0_i32_0 = arith.constant 0 : i32
    return %c0_i32, %arg0 : i32, i32
  }
  func.func @transform_3(%arg0: i32) -> (i32, i32) {
    %c0_i32 = arith.constant 0 : i32
    %c0_i32_0 = arith.constant 0 : i32
    return %c0_i32, %arg0 : i32, i32
  }
}

module attributes {stable_mosaic.version = 11 : i64} {
  func.func @_fused_tail_kernel(%arg0: i32, %arg1: memref<8x512xbf16, #tpu.memory_space<vmem>>, %arg2: memref<512x256xbf16, #tpu.memory_space<vmem>>, %arg3: memref<1x256xf32, #tpu.memory_space<vmem>>, %arg4: memref<1x256xbf16, #tpu.memory_space<vmem>>, %arg5: memref<1x1xf32, #tpu.memory_space<vmem>>, %arg6: memref<8x1xf32, #tpu.memory_space<vmem>>) attributes {dimension_semantics = [#tpu.dimension_semantics<arbitrary>], iteration_bounds = array<i64: 1>, scalar_prefetch = 0 : i64, scratch_operands = 0 : i64, tpu.core_type = #tpu.core_type<tc>, window_params = [{pipeline_mode = #tpu.pipeline_mode<synchronous>, transform_indices = @transform_0, window_bounds = array<i64: 8, 512>}, {transform_indices = @transform_1, window_bounds = array<i64: 512, 256>}, {transform_indices = @transform_2, window_bounds = array<i64: 1, 256>}, {transform_indices = @transform_3, window_bounds = array<i64: 1, 256>}, {pipeline_mode = #tpu.pipeline_mode<synchronous>, transform_indices = @transform_4, window_bounds = array<i64: 1, 1>}, {pipeline_mode = #tpu.pipeline_mode<synchronous>, transform_indices = @transform_5, window_bounds = array<i64: 8, 1>}]} {
    %c0 = arith.constant 0 : index
    %c0_0 = arith.constant 0 : index
    %0 = vector.load %arg1[%c0, %c0_0] : memref<8x512xbf16, #tpu.memory_space<vmem>>, vector<8x512xbf16>
    %c0_1 = arith.constant 0 : index
    %c0_2 = arith.constant 0 : index
    %1 = vector.load %arg2[%c0_1, %c0_2] : memref<512x256xbf16, #tpu.memory_space<vmem>>, vector<512x256xbf16>
    %cst = arith.constant dense<0.000000e+00> : vector<8x256xf32>
    %2 = tpu.matmul %0, %1, %cst {dimension_numbers = #tpu.dot_dimension_numbers<[1], [0], [0], [1], [0, 0, 1, 1], [], []>} : vector<8x512xbf16>, vector<512x256xbf16>, vector<8x256xf32> -> vector<8x256xf32>
    %c0_3 = arith.constant 0 : index
    %c0_4 = arith.constant 0 : index
    %3 = vector.load %arg3[%c0_3, %c0_4] : memref<1x256xf32, #tpu.memory_space<vmem>>, vector<1x256xf32>
    %4 = vector.broadcast %3 : vector<1x256xf32> to vector<8x256xf32>
    %5 = arith.addf %2, %4 : vector<8x256xf32>
    %cst_5 = arith.constant 0.000000e+00 : f32
    %6 = vector.broadcast %cst_5 : f32 to vector<8x256xf32>
    %7 = arith.maximumf %5, %6 : vector<8x256xf32>
    %c0_6 = arith.constant 0 : index
    %c0_7 = arith.constant 0 : index
    %8 = vector.load %arg4[%c0_6, %c0_7] : memref<1x256xbf16, #tpu.memory_space<vmem>>, vector<1x256xbf16>
    %9 = arith.extf %8 : vector<1x256xbf16> to vector<1x256xf32>
    %10 = vector.broadcast %9 : vector<1x256xf32> to vector<8x256xf32>
    %11 = arith.mulf %7, %10 : vector<8x256xf32>
    %cst_8 = arith.constant dense<0.000000e+00> : vector<8xf32>
    %12 = vector.multi_reduction <add>, %11, %cst_8 [1] : vector<8x256xf32> to vector<8xf32>
    %13 = vector.shape_cast %12 : vector<8xf32> to vector<8x1xf32>
    %c0_i32 = arith.constant 0 : i32
    %14 = arith.cmpi eq, %arg0, %c0_i32 : i32
    %15 = arith.extui %14 : i1 to i32
    %c0_i32_9 = arith.constant 0 : i32
    %16 = arith.cmpi ne, %15, %c0_i32_9 : i32
    scf.if %16 {
      %cst_16 = arith.constant 0.000000e+00 : f32
      %23 = vector.broadcast %cst_16 : f32 to vector<8x1xf32>
      %c0_17 = arith.constant 0 : index
      %c0_18 = arith.constant 0 : index
      %24 = vector.load %arg6[%c0_17, %c0_18] : memref<8x1xf32, #tpu.memory_space<vmem>>, vector<8x1xf32>
      tpu.vector_store %arg6[%c0_17, %c0_18], %23 {strides = array<i32>} : memref<8x1xf32, #tpu.memory_space<vmem>>, vector<8x1xf32>,
    } else {
    }
    %c0_10 = arith.constant 0 : index
    %c0_11 = arith.constant 0 : index
    %17 = vector.load %arg6[%c0_10, %c0_11] : memref<8x1xf32, #tpu.memory_space<vmem>>, vector<8x1xf32>
    %18 = arith.addf %17, %13 : vector<8x1xf32>
    %c0_12 = arith.constant 0 : index
    %c0_13 = arith.constant 0 : index
    %19 = vector.load %arg6[%c0_12, %c0_13] : memref<8x1xf32, #tpu.memory_space<vmem>>, vector<8x1xf32>
    tpu.vector_store %arg6[%c0_12, %c0_13], %18 {strides = array<i32>} : memref<8x1xf32, #tpu.memory_space<vmem>>, vector<8x1xf32>,
    %c0_i32_14 = arith.constant 0 : i32
    %20 = arith.cmpi eq, %arg0, %c0_i32_14 : i32
    %21 = arith.extui %20 : i1 to i32
    %c0_i32_15 = arith.constant 0 : i32
    %22 = arith.cmpi ne, %21, %c0_i32_15 : i32
    scf.if %22 {
      %c0_16 = arith.constant 0 : index
      %c0_17 = arith.constant 0 : index
      %23 = vector.load %arg6[%c0_16, %c0_17] : memref<8x1xf32, #tpu.memory_space<vmem>>, vector<8x1xf32>
      %c0_18 = arith.constant 0 : index
      %c0_19 = arith.constant 0 : index
      %24 = vector.load %arg5[%c0_18, %c0_19] : memref<1x1xf32, #tpu.memory_space<vmem>>, vector<1x1xf32>
      %25 = vector.broadcast %24 : vector<1x1xf32> to vector<8x1xf32>
      %26 = arith.addf %23, %25 : vector<8x1xf32>
      %cst_20 = arith.constant 0.000000e+00 : f32
      %27 = vector.broadcast %cst_20 : f32 to vector<8x1xf32>
      %28 = arith.maximumf %26, %27 : vector<8x1xf32>
      %c0_21 = arith.constant 0 : index
      %c0_22 = arith.constant 0 : index
      %29 = vector.load %arg6[%c0_21, %c0_22] : memref<8x1xf32, #tpu.memory_space<vmem>>, vector<8x1xf32>
      tpu.vector_store %arg6[%c0_21, %c0_22], %28 {strides = array<i32>} : memref<8x1xf32, #tpu.memory_space<vmem>>, vector<8x1xf32>,
    } else {
    }
    return
  }
  func.func @transform_0(%arg0: i32) -> (i32, i32) {
    %c0_i32 = arith.constant 0 : i32
    %c0_i32_0 = arith.constant 0 : i32
    %c0_i32_1 = arith.constant 0 : i32
    return %c0_i32, %c0_i32_0 : i32, i32
  }
  func.func @transform_1(%arg0: i32) -> (i32, i32) {
    %c0_i32 = arith.constant 0 : i32
    %c0_i32_0 = arith.constant 0 : i32
    return %c0_i32, %arg0 : i32, i32
  }
  func.func @transform_2(%arg0: i32) -> (i32, i32) {
    %c0_i32 = arith.constant 0 : i32
    %c0_i32_0 = arith.constant 0 : i32
    return %c0_i32, %arg0 : i32, i32
  }
  func.func @transform_3(%arg0: i32) -> (i32, i32) {
    %c0_i32 = arith.constant 0 : i32
    %c0_i32_0 = arith.constant 0 : i32
    return %c0_i32, %arg0 : i32, i32
  }
  func.func @transform_4(%arg0: i32) -> (i32, i32) {
    %c0_i32 = arith.constant 0 : i32
    %c0_i32_0 = arith.constant 0 : i32
    %c0_i32_1 = arith.constant 0 : i32
    return %c0_i32, %c0_i32_0 : i32, i32
  }
  func.func @transform_5(%arg0: i32) -> (i32, i32) {
    %c0_i32 = arith.constant 0 : i32
    %c0_i32_0 = arith.constant 0 : i32
    %c0_i32_1 = arith.constant 0 : i32
    return %c0_i32, %c0_i32_0 : i32, i32
  }
}

</mosaic_0001>

<bundles_post_ra>
// kernel: net_without_ldl_and_cnn_forward.7
= control target key start
LH: loop header
LB: loop body
LE: loop exit
PB: predicated region body
PF: predicated region fallthrough
CT: control target
= control target key end

     0   :  { %s1024_s0 = inlined_call_operand.vmem [shape: bf16[8,512], index: 0, kind: input, shape index: {}]   ;;  %s1025_s1 = inlined_call_operand.hbm [shape: bf16[512,256], index: 1, kind: input, shape index: {}]   ;;  %s1026_s2 = inlined_call_operand.vmem [shape: f32[1,256], index: 2, kind: input, shape index: {}]   ;;  %s1027_s3 = inlined_call_operand.vmem [shape: bf16[1,256], index: 3, kind: input, shape index: {}]   ;;  %s1028_s4 = inlined_call_operand.<no memory space> [shape: f32[1,1], index: 4, kind: input, shape index: {}]   ;;  %s1029_s5 = inlined_call_operand.vmem [shape: f32[8,1], index: 5, kind: output, shape index: {}]  }
   0x1   :  { %v10_v0 = vstv %s1028_s4 }
   0x2   :  { %11 = vst [vmem:[#allocation2] sm:$0x1] %v10_v0 }
   0x3   :  { %12 = vsyncpa [#allocation4], 0  ;;  %s19_s22 = sshll.u32 %s1025_s1, 4  ;;  %s941_s23 = smov [#allocation3]   ;;  %s20_s22 = int_to_ptr.hbm [resolvable:$true] %s19_s22 }
   0x4   :  { %s21_s24 = sshll.u32 %s941_s23, 4  ;;  %s942_s25 = smov 128   ;;  %s22_s24 = int_to_ptr.vmem [resolvable:$true] %s21_s24 }
   0x5   :  { %s943_s26 = smov 8  }
   0x6   :  { %27 = dma.hbm_to_vmem [thread:$0]  %s20_s22, 8192, %s22_s24, [#allocation4], %s942_s25, %s942_s25, %s943_s26  }
   0x7   :  { %939 = dma.done.wait [#allocation4], 8192  }
   0x8   :  { %940 = vsyncadd [#allocation4], 4294959104  ;;  %v648_v1 = vld [vmem:[#allocation3 + $0x70] sm:$0xf]  ;;  %v861_v2 = vld [vmem:[#allocation3 + $0x74] sm:$0xf0] }
   0x9   :  { %v712_v3 = vld [vmem:[#allocation3 + $0xf0] sm:$0xf]  ;;  %v649_v4 = vor.u32 %v861_v2, %v648_v1  ;;  %v877_v5 = vld [vmem:[#allocation3 + $0xf4] sm:$0xf0]  ;;  %v640_v12 = vld [vmem:[#allocation3 + $0x60] sm:$0xf] }
   0xa   :  { %v776_v6 = vld [vmem:[#allocation3 + $0x170] sm:$0xf]  ;;  %v893_v7 = vld [vmem:[#allocation3 + $0x174] sm:$0xf0]  ;;  %v713_v8 = vor.u32 %v877_v5, %v712_v3  ;;  %v859_v14 = vld [vmem:[#allocation3 + $0x64] sm:$0xf0] }
   0xb   :  { %v777_v9 = vor.u32 %v893_v7, %v776_v6  ;;  %v840_v10 = vld [vmem:[#allocation3 + $0x1f0] sm:$0xf]  ;;  %v909_v11 = vld [vmem:[#allocation3 + $0x1f4] sm:$0xf0]  ;;  %444 = vmatpush.bf16.msra.mxu0 %v649_v4  ;;  %v704_v15 = vld [vmem:[#allocation3 + $0xe0] sm:$0xf]  ;;  %v641_v17 = vor.u32 %v859_v14, %v640_v12 }
   0xc   :  { %v841_v13 = vor.u32 %v909_v11, %v840_v10  ;;  %v875_v16 = vld [vmem:[#allocation3 + $0xe4] sm:$0xf0]  ;;  %457 = vmatpush.bf16.msra.mxu1 %v713_v8  ;;  %v768_v19 = vld [vmem:[#allocation3 + $0x160] sm:$0xf]  ;;  %v632_v24 = vld [vmem:[#allocation3 + $0x50] sm:$0xf] }
   0xd   :  { %470 = vmatpush.bf16.msra.mxu2 %v777_v9  ;;  %v705_v18 = vor.u32 %v875_v16, %v704_v15  ;;  %v891_v20 = vld [vmem:[#allocation3 + $0x164] sm:$0xf0]  ;;  %v832_v21 = vld [vmem:[#allocation3 + $0x1e0] sm:$0xf]  ;;  %v857_v25 = vld [vmem:[#allocation3 + $0x54] sm:$0xf0] }
   0xe   :  { %483 = vmatpush.bf16.msra.mxu3 %v841_v13  ;;  %v769_v22 = vor.u32 %v891_v20, %v768_v19  ;;  %v907_v23 = vld [vmem:[#allocation3 + $0x1e4] sm:$0xf0]  ;;  %v696_v27 = vld [vmem:[#allocation3 + $0xd0] sm:$0xf]  ;;  %v873_v28 = vld [vmem:[#allocation3 + $0xd4] sm:$0xf0]  ;;  %v633_v30 = vor.u32 %v857_v25, %v632_v24 }
   0xf   :  { %v833_v26 = vor.u32 %v907_v23, %v832_v21  ;;  %v760_v29 = vld [vmem:[#allocation3 + $0x150] sm:$0xf]  ;;  %445 = vmatpush.bf16.msra.mxu0 %v641_v17  ;;  %v889_v31 = vld [vmem:[#allocation3 + $0x154] sm:$0xf0]  ;;  %v697_v34 = vor.u32 %v873_v28, %v696_v27  ;;  %v624_v36 = vld [vmem:[#allocation3 + $0x40] sm:$0xf] }
  0x10   :  { %v824_v32 = vld [vmem:[#allocation3 + $0x1d0] sm:$0xf]  ;;  %v905_v33 = vld [vmem:[#allocation3 + $0x1d4] sm:$0xf0]  ;;  %458 = vmatpush.bf16.msra.mxu1 %v705_v18  ;;  %v761_v35 = vor.u32 %v889_v31, %v760_v29  ;;  %v855_v37 = vld [vmem:[#allocation3 + $0x44] sm:$0xf0] }
  0x11   :  { %471 = vmatpush.bf16.msra.mxu2 %v769_v22  ;;  %v688_v38 = vld [vmem:[#allocation3 + $0xc0] sm:$0xf]  ;;  %v825_v39 = vor.u32 %v905_v33, %v824_v32  ;;  %v871_v40 = vld [vmem:[#allocation3 + $0xc4] sm:$0xf0]  ;;  %v625_v45 = vor.u32 %v855_v37, %v624_v36  ;;  %v616_v48 = vld [vmem:[#allocation3 + $0x30] sm:$0xf] }
  0x12   :  { %484 = vmatpush.bf16.msra.mxu3 %v833_v26  ;;  %v752_v41 = vld [vmem:[#allocation3 + $0x140] sm:$0xf]  ;;  %v887_v42 = vld [vmem:[#allocation3 + $0x144] sm:$0xf0]  ;;  %v689_v46 = vor.u32 %v871_v40, %v688_v38  ;;  %v853_v49 = vld [vmem:[#allocation3 + $0x34] sm:$0xf0] }
  0x13   :  { %v816_v43 = vld [vmem:[#allocation3 + $0x1c0] sm:$0xf]  ;;  %v903_v44 = vld [vmem:[#allocation3 + $0x1c4] sm:$0xf0]  ;;  %446 = vmatpush.bf16.msra.mxu0 %v633_v30  ;;  %v753_v47 = vor.u32 %v887_v42, %v752_v41  ;;  %v680_v50 = vld [vmem:[#allocation3 + $0xb0] sm:$0xf]  ;;  %v617_v57 = vor.u32 %v853_v49, %v616_v48 }
  0x14   :  { %459 = vmatpush.bf16.msra.mxu1 %v697_v34  ;;  %v817_v51 = vor.u32 %v903_v44, %v816_v43  ;;  %v869_v52 = vld [vmem:[#allocation3 + $0xb4] sm:$0xf0]  ;;  %v744_v53 = vld [vmem:[#allocation3 + $0x130] sm:$0xf]  ;;  %v608_v60 = vld [vmem:[#allocation3 + $0x20] sm:$0xf] }
  0x15   :  { %472 = vmatpush.bf16.msra.mxu2 %v761_v35  ;;  %v885_v54 = vld [vmem:[#allocation3 + $0x134] sm:$0xf0]  ;;  %v808_v55 = vld [vmem:[#allocation3 + $0x1b0] sm:$0xf]  ;;  %v681_v58 = vor.u32 %v869_v52, %v680_v50  ;;  %v851_v61 = vld [vmem:[#allocation3 + $0x24] sm:$0xf0] }
  0x16   :  { %485 = vmatpush.bf16.msra.mxu3 %v825_v39  ;;  %v901_v56 = vld [vmem:[#allocation3 + $0x1b4] sm:$0xf0]  ;;  %v745_v59 = vor.u32 %v885_v54, %v744_v53  ;;  %v672_v62 = vld [vmem:[#allocation3 + $0xa0] sm:$0xf]  ;;  %v867_v0 = vld [vmem:[#allocation3 + $0xa4] sm:$0xf0]  ;;  %v609_v5 = vor.u32 %v851_v61, %v608_v60 }
  0x17   :  { %447 = vmatpush.bf16.msra.mxu0 %v625_v45  ;;  %v809_v63 = vor.u32 %v901_v56, %v808_v55  ;;  %v736_v1 = vld [vmem:[#allocation3 + $0x120] sm:$0xf]  ;;  %v883_v2 = vld [vmem:[#allocation3 + $0x124] sm:$0xf0]  ;;  %v673_v6 = vor.u32 %v867_v0, %v672_v62  ;;  %v600_v8 = vld [vmem:[#allocation3 + $0x10] sm:$0xf] }
  0x18   :  { %460 = vmatpush.bf16.msra.mxu1 %v689_v46  ;;  %v800_v3 = vld [vmem:[#allocation3 + $0x1a0] sm:$0xf]  ;;  %v899_v4 = vld [vmem:[#allocation3 + $0x1a4] sm:$0xf0]  ;;  %v737_v7 = vor.u32 %v883_v2, %v736_v1  ;;  %v849_v9 = vld [vmem:[#allocation3 + $0x14] sm:$0xf0] }
  0x19   :  { %473 = vmatpush.bf16.msra.mxu2 %v753_v47  ;;  %v664_v10 = vld [vmem:[#allocation3 + $0x90] sm:$0xf]  ;;  %v801_v11 = vor.u32 %v899_v4, %v800_v3  ;;  %v865_v12 = vld [vmem:[#allocation3 + $0x94] sm:$0xf0]  ;;  %v601_v17 = vor.u32 %v849_v9, %v600_v8  ;;  %v592_v18 = vld [vmem:[#allocation3] sm:$0xf] }
  0x1a   :  { %486 = vmatpush.bf16.msra.mxu3 %v817_v51  ;;  %v728_v13 = vld [vmem:[#allocation3 + $0x110] sm:$0xf]  ;;  %v881_v14 = vld [vmem:[#allocation3 + $0x114] sm:$0xf0]  ;;  %v847_v19 = vld [vmem:[#allocation3 + $0x4] sm:$0xf0]  ;;  %v665_v21 = vor.u32 %v865_v12, %v664_v10 }
  0x1b   :  { %448 = vmatpush.bf16.msra.mxu0 %v617_v57  ;;  %v792_v15 = vld [vmem:[#allocation3 + $0x190] sm:$0xf]  ;;  %v897_v16 = vld [vmem:[#allocation3 + $0x194] sm:$0xf0]  ;;  %v656_v20 = vld [vmem:[#allocation3 + $0x80] sm:$0xf]  ;;  %v729_v22 = vor.u32 %v881_v14, %v728_v13  ;;  %v593_v33 = vor.u32 %v847_v19, %v592_v18 }
  0x1c   :  { %461 = vmatpush.bf16.msra.mxu1 %v681_v58  ;;  %v863_v23 = vld [vmem:[#allocation3 + $0x84] sm:$0xf0]  ;;  %v720_v24 = vld [vmem:[#allocation3 + $0x100] sm:$0xf]  ;;  %v793_v26 = vor.u32 %v897_v16, %v792_v15  ;;  %v860_v29 = vld [vmem:[#allocation3 + $0x74] sm:$0xf] }
  0x1d   :  { %474 = vmatpush.bf16.msra.mxu2 %v745_v59  ;;  %v879_v25 = vld [vmem:[#allocation3 + $0x104] sm:$0xf0]  ;;  %v784_v27 = vld [vmem:[#allocation3 + $0x180] sm:$0xf]  ;;  %v650_v30 = vld [vmem:[#allocation3 + $0x78] sm:$0xf0]  ;;  %v657_v38 = vor.u32 %v863_v23, %v656_v20 }
  0x1e   :  { %487 = vmatpush.bf16.msra.mxu3 %v809_v63  ;;  %v895_v28 = vld [vmem:[#allocation3 + $0x184] sm:$0xf0]  ;;  %v876_v31 = vld [vmem:[#allocation3 + $0xf4] sm:$0xf]  ;;  %v714_v34 = vld [vmem:[#allocation3 + $0xf8] sm:$0xf0]  ;;  %v721_v39 = vor.u32 %v879_v25, %v720_v24  ;;  %v653_v44 = vor.u32 %v860_v29, %v650_v30 }
  0x1f   :  { %449 = vmatpush.bf16.msra.mxu0 %v609_v5  ;;  %v39_v32 = vld [vmem:[%s1024_s0 + $0x8] sm:$0xff]  ;;  %v892_v35 = vld [vmem:[#allocation3 + $0x174] sm:$0xf]  ;;  %v778_v36 = vld [vmem:[#allocation3 + $0x178] sm:$0xf0]  ;;  %v785_v43 = vor.u32 %v895_v28, %v784_v27  ;;  %v717_v46 = vor.u32 %v876_v31, %v714_v34  ;;  %vm568_vm0 = vcmask 7168  }
  0x20   :  { %462 = vmatpush.bf16.msra.mxu1 %v673_v6  ;;  %v114_v37 = vunpack.c.l.b16 %v39_v32  ;;  %v908_v40 = vld [vmem:[#allocation3 + $0x1f4] sm:$0xf]  ;;  %v842_v41 = vld [vmem:[#allocation3 + $0x1f8] sm:$0xf0]  ;;  %v115_v42 = vunpack.c.h.b16 %v39_v32  ;;  %v781_v47 = vor.u32 %v892_v35, %v778_v36  ;;  %v858_v48 = vld [vmem:[#allocation3 + $0x64] sm:$0xf] }
  0x21   :  { %475 = vmatpush.bf16.msra.mxu2 %v737_v7  ;;  %v38_v45 = vld [vmem:[%s1024_s0] sm:$0xff]  ;;  %v642_v49 = vld [vmem:[#allocation3 + $0x68] sm:$0xf0]  ;;  %v845_v53 = vor.u32 %v908_v40, %v842_v41  ;;  %v856_v2 = vld [vmem:[#allocation3 + $0x54] sm:$0xf] }
  0x22   :  { %488 = vmatpush.bf16.msra.mxu3 %v801_v11  ;;  %v874_v50 = vld [vmem:[#allocation3 + $0xe4] sm:$0xf]  ;;  %v112_v51 = vunpack.c.l.b16 %v38_v45  ;;  %v113_v52 = vunpack.c.h.b16 %v38_v45  ;;  %v706_v54 = vld [vmem:[#allocation3 + $0xe8] sm:$0xf0]  ;;  %v987_v57 = vpack.c.b16 %v114_v37, %v114_v37  ;;  %v991_v61 = vpack.c.b16 %v115_v42, %v115_v42  ;;  %v634_v3 = vld [vmem:[#allocation3 + $0x58] sm:$0xf0] }
  0x23   :  { %450 = vmatpush.bf16.msra.mxu0 %v601_v17  ;;  %v890_v55 = vld [vmem:[#allocation3 + $0x164] sm:$0xf]  ;;  %v770_v56 = vld [vmem:[#allocation3 + $0x168] sm:$0xf0]  ;;  %v645_v62 = vor.u32 %v858_v48, %v642_v49  ;;  %v709_v0 = vor.u32 %v874_v50, %v706_v54  ;;  %v872_v4 = vld [vmem:[#allocation3 + $0xd4] sm:$0xf]  ;;  %v637_v11 = vor.u32 %v856_v2, %v634_v3 }
  0x24   :  { %463 = vmatpush.bf16.msra.mxu1 %v665_v21  ;;  %v906_v58 = vld [vmem:[#allocation3 + $0x1e4] sm:$0xf]  ;;  %v834_v59 = vld [vmem:[#allocation3 + $0x1e8] sm:$0xf0]  ;;  %v989_v60 = vpack.c.b16 %v112_v51, %v112_v51  ;;  %v993_v63 = vpack.c.b16 %v113_v52, %v113_v52  ;;  %v773_v1 = vor.u32 %v890_v55, %v770_v56  ;;  %v698_v6 = vld [vmem:[#allocation3 + $0xd8] sm:$0xf0] }
  0x25   :  { %476 = vmatpush.bf16.msra.mxu2 %v729_v22  ;;  %v837_v5 = vor.u32 %v906_v58, %v834_v59  ;;  %v888_v7 = vld [vmem:[#allocation3 + $0x154] sm:$0xf]  ;;  %v762_v8 = vld [vmem:[#allocation3 + $0x158] sm:$0xf0]  ;;  %v701_v12 = vor.u32 %v872_v4, %v698_v6  ;;  %v854_v14 = vld [vmem:[#allocation3 + $0x44] sm:$0xf] }
  0x26   :  { %489 = vmatpush.bf16.msra.mxu3 %v793_v26  ;;  %v904_v9 = vld [vmem:[#allocation3 + $0x1d4] sm:$0xf]  ;;  %v826_v10 = vld [vmem:[#allocation3 + $0x1d8] sm:$0xf0]  ;;  %v765_v13 = vor.u32 %v888_v7, %v762_v8  ;;  %v626_v15 = vld [vmem:[#allocation3 + $0x48] sm:$0xf0] }
  0x27   :  { %451 = vmatpush.bf16.msra.mxu0 %v593_v33  ;;  %v870_v16 = vld [vmem:[#allocation3 + $0xc4] sm:$0xf]  ;;  %v829_v17 = vor.u32 %v904_v9, %v826_v10  ;;  %v690_v18 = vld [vmem:[#allocation3 + $0xc8] sm:$0xf0]  ;;  %v629_v23 = vor.u32 %v854_v14, %v626_v15  ;;  %v852_v24 = vld [vmem:[#allocation3 + $0x34] sm:$0xf] }
  0x28   :  { %464 = vmatpush.bf16.msra.mxu1 %v657_v38  ;;  %v886_v19 = vld [vmem:[#allocation3 + $0x144] sm:$0xf]  ;;  %v754_v20 = vld [vmem:[#allocation3 + $0x148] sm:$0xf0]  ;;  %v693_v25 = vor.u32 %v870_v16, %v690_v18  ;;  %v618_v27 = vld [vmem:[#allocation3 + $0x38] sm:$0xf0] }
  0x29   :  { %477 = vmatpush.bf16.msra.mxu2 %v721_v39  ;;  %v902_v21 = vld [vmem:[#allocation3 + $0x1c4] sm:$0xf]  ;;  %v818_v22 = vld [vmem:[#allocation3 + $0x1c8] sm:$0xf0]  ;;  %v757_v26 = vor.u32 %v886_v19, %v754_v20  ;;  %v868_v28 = vld [vmem:[#allocation3 + $0xb4] sm:$0xf]  ;;  %v621_v35 = vor.u32 %v852_v24, %v618_v27 }
  0x2a   :  { %490 = vmatpush.bf16.msra.mxu3 %v785_v43  ;;  %452 = vmatmul.bf16.vlgmr.msra.gmra.mxu0 %v989_v60  ;;  %v682_v29 = vld [vmem:[#allocation3 + $0xb8] sm:$0xf0]  ;;  %v821_v30 = vor.u32 %v902_v21, %v818_v22  ;;  %v884_v31 = vld [vmem:[#allocation3 + $0x134] sm:$0xf]  ;;  %v850_v38 = vld [vmem:[#allocation3 + $0x24] sm:$0xf] }
  0x2b   :  { %496 = vmatpush.bf16.msrb.mxu0 %v653_v44  ;;  %465 = vmatmul.bf16.vlgmr.msra.gmra.mxu1 %v993_v63  ;;  %v746_v32 = vld [vmem:[#allocation3 + $0x138] sm:$0xf0]  ;;  %v900_v33 = vld [vmem:[#allocation3 + $0x1b4] sm:$0xf]  ;;  %v685_v36 = vor.u32 %v868_v28, %v682_v29  ;;  %v610_v39 = vld [vmem:[#allocation3 + $0x28] sm:$0xf0] }
  0x2c   :  { %509 = vmatpush.bf16.msrb.mxu1 %v717_v46  ;;  %478 = vmatmul.bf16.vlgmr.msra.gmra.mxu2 %v987_v57  ;;  %v810_v34 = vld [vmem:[#allocation3 + $0x1b8] sm:$0xf0]  ;;  %v749_v37 = vor.u32 %v884_v31, %v746_v32  ;;  %v866_v40 = vld [vmem:[#allocation3 + $0xa4] sm:$0xf]  ;;  %v674_v42 = vld [vmem:[#allocation3 + $0xa8] sm:$0xf0] }
  0x2d   :  { %522 = vmatpush.bf16.msrb.mxu2 %v781_v47  ;;  %491 = vmatmul.bf16.vlgmr.msra.gmra.mxu3 %v991_v61  ;;  %v813_v41 = vor.u32 %v900_v33, %v810_v34  ;;  %v882_v43 = vld [vmem:[#allocation3 + $0x124] sm:$0xf]  ;;  %v738_v44 = vld [vmem:[#allocation3 + $0x128] sm:$0xf0]  ;;  %v613_v47 = vor.u32 %v850_v38, %v610_v39  ;;  %v677_v48 = vor.u32 %v866_v40, %v674_v42  ;;  %v848_v50 = vld [vmem:[#allocation3 + $0x14] sm:$0xf] }
  0x2e   :  { %535 = vmatpush.bf16.msrb.mxu3 %v845_v53  ;;  %v898_v45 = vld [vmem:[#allocation3 + $0x1a4] sm:$0xf]  ;;  %v802_v46 = vld [vmem:[#allocation3 + $0x1a8] sm:$0xf0]  ;;  %v741_v49 = vor.u32 %v882_v43, %v738_v44  ;;  %v602_v51 = vld [vmem:[#allocation3 + $0x18] sm:$0xf0] }
  0x2f   :  { %497 = vmatpush.bf16.msrb.mxu0 %v645_v62  ;;  %v864_v52 = vld [vmem:[#allocation3 + $0x94] sm:$0xf]  ;;  %v805_v53 = vor.u32 %v898_v45, %v802_v46  ;;  %v666_v54 = vld [vmem:[#allocation3 + $0x98] sm:$0xf0]  ;;  %v605_v62 = vor.u32 %v848_v50, %v602_v51  ;;  %v846_v2 = vld [vmem:[#allocation3 + $0x4] sm:$0xf] }
  0x30   :  { %510 = vmatpush.bf16.msrb.mxu1 %v709_v0  ;;  %v880_v55 = vld [vmem:[#allocation3 + $0x114] sm:$0xf]  ;;  %v730_v56 = vld [vmem:[#allocation3 + $0x118] sm:$0xf0]  ;;  %v669_v0 = vor.u32 %v864_v52, %v666_v54  ;;  %v594_v3 = vld [vmem:[#allocation3 + $0x8] sm:$0xf0] }
  0x31   :  { %523 = vmatpush.bf16.msrb.mxu2 %v773_v1  ;;  %v896_v58 = vld [vmem:[#allocation3 + $0x194] sm:$0xf]  ;;  %v794_v59 = vld [vmem:[#allocation3 + $0x198] sm:$0xf0]  ;;  %v733_v1 = vor.u32 %v880_v55, %v730_v56  ;;  %v862_v4 = vld [vmem:[#allocation3 + $0x84] sm:$0xf] }
  0x32   :  { %536 = vmatpush.bf16.msrb.mxu3 %v837_v5  ;;  %v797_v5 = vor.u32 %v896_v58, %v794_v59  ;;  %v658_v6 = vld [vmem:[#allocation3 + $0x88] sm:$0xf0]  ;;  %v878_v7 = vld [vmem:[#allocation3 + $0x104] sm:$0xf] }
  0x33   :  { %498 = vmatpush.bf16.msrb.mxu0 %v637_v11  ;;  %v722_v8 = vld [vmem:[#allocation3 + $0x108] sm:$0xf0]  ;;  %v894_v9 = vld [vmem:[#allocation3 + $0x184] sm:$0xf]  ;;  %v597_v11 = vor.u32 %v846_v2, %v594_v3 }
  0x34   :  { %511 = vmatpush.bf16.msrb.mxu1 %v701_v12  ;;  %v786_v10 = vld [vmem:[#allocation3 + $0x188] sm:$0xf0]  ;;  %v661_v12 = vor.u32 %v862_v4, %v658_v6 }
  0x35   :  { %524 = vmatpush.bf16.msrb.mxu2 %v765_v13  ;;  %v725_v13 = vor.u32 %v878_v7, %v722_v8  ;;  %v789_v14 = vor.u32 %v894_v9, %v786_v10 }
  0x36   :  { %537 = vmatpush.bf16.msrb.mxu3 %v829_v17 }
  0x37   :  { %499 = vmatpush.bf16.msrb.mxu0 %v629_v23  ;;  %v104_v23 = vld [vmem:[%s1026_s2] sm:$0x3] }
  0x38   :  { %512 = vmatpush.bf16.msrb.mxu1 %v693_v25  ;;  %v106_v24 = vperm.slane %v104_v23, 0  ;;  %v107_v25 = vperm.slane %v104_v23, 1 }
  0x39   :  { %525 = vmatpush.bf16.msrb.mxu2 %v757_v26 }
  0x3a   :  { %538 = vmatpush.bf16.msrb.mxu3 %v821_v30 }
  0x3b   :  { %500 = vmatpush.bf16.msrb.mxu0 %v621_v35 }
  0x3c   :  { %513 = vmatpush.bf16.msrb.mxu1 %v685_v36 }
  0x3d   :  { %526 = vmatpush.bf16.msrb.mxu2 %v749_v37 }
  0x3e   :  { %539 = vmatpush.bf16.msrb.mxu3 %v813_v41 }
  0x3f   :  { %501 = vmatpush.bf16.msrb.mxu0 %v613_v47 }
  0x40   :  { %514 = vmatpush.bf16.msrb.mxu1 %v677_v48 }
  0x41   :  { %527 = vmatpush.bf16.msrb.mxu2 %v741_v49  ;;  %v944_v49 = vmov 0.0  }
  0x42   :  { %540 = vmatpush.bf16.msrb.mxu3 %v805_v53  ;;  %569 = vst.msk [vmem:[%s1029_s5] sm:$0xff] %vm568_vm0, %v944_v49  ;;  %v914_v53 = vld [vmem:[#allocation2] ss:$0 sm:$0xff] }
  0x43   :  { %502 = vmatpush.bf16.msrb.mxu0 %v605_v62 }
  0x44   :  { %515 = vmatpush.bf16.msrb.mxu1 %v669_v0 }
  0x45   :  { %528 = vmatpush.bf16.msrb.mxu2 %v733_v1 }
  0x46   :  { %541 = vmatpush.bf16.msrb.mxu3 %v797_v5 }
  0x47   :  { %503 = vmatpush.bf16.msrb.mxu0 %v597_v11 }
  0x48   :  { %516 = vmatpush.bf16.msrb.mxu1 %v661_v12 }
  0x49   :  { %529 = vmatpush.bf16.msrb.mxu2 %v725_v13  ;;  %v570_v50 = vld [vmem:[%s1029_s5] sm:$0xff] }
  0x4a   :  { %542 = vmatpush.bf16.msrb.mxu3 %v789_v14  ;;  %504 = vmatmul.bf16.vlgmr.msrb.gmra.mxu0 %v989_v60 }
  0x4b   :  { %517 = vmatmul.bf16.vlgmr.msrb.gmra.mxu1 %v993_v63 }
  0x4c   :  { %530 = vmatmul.bf16.vlgmr.msrb.gmra.mxu2 %v987_v57  ;;  %v550_v57 = vld [vmem:[%s1027_s3] sm:$0x3] }
  0x4d   :  { %543 = vmatmul.bf16.vlgmr.msrb.gmra.mxu3 %v991_v61  ;;  %v551_v29 = vunpack.c.l.bf16 %v550_v57 }
  0x4f   :  { %v553_v32 = vperm.slane %v551_v29, 0  ;;  %v554_v33 = vperm.slane %v551_v29, 2 }
  0x51   :  { %v557_v41 = vperm.slane %v553_v32, 0  ;;  %v558_v42 = vperm.slane %v554_v33, 0 }
  0xa7   :  { %v453_v15 = vpop.f32.mrf.mxu0 }
  0xa8   :  { %v466_v16 = vpop.f32.mrf.mxu1  ;;  %v454_v60 = vadd.f32 %v453_v15, %v106_v24 }
  0xaa   :  { %v467_v63 = vadd.f32 %v466_v16, %v454_v60 }
  0xaf   :  { %v479_v17 = vpop.f32.mrf.mxu2  ;;  %v455_v19 = vpop.f32.mrf.mxu0 }
  0xb0   :  { %v492_v18 = vpop.f32.mrf.mxu3  ;;  %v468_v20 = vpop.f32.mrf.mxu1  ;;  %v480_v28 = vadd.f32 %v479_v17, %v467_v63 }
  0xb2   :  { %v493_v31 = vadd.f32 %v492_v18, %v480_v28 }
  0xb4   :  { %v548_v39 = vmax.f32 %v493_v31, 0.0 }
  0xb6   :  { %v559_v44 = vmul.f32 %v557_v41, %v548_v39 }
  0xb7   :  { %v481_v21 = vpop.f32.mrf.mxu2 }
  0xb8   :  { %v494_v22 = vpop.f32.mrf.mxu3 }
  0xc7   :  { %v505_v61 = vpop.f32.mrf.mxu0 }
  0xc8   :  { %v506_v26 = vadd.f32 %v505_v61, %v107_v25  ;;  %v518_v27 = vpop.f32.mrf.mxu1 }
  0xca   :  { %v519_v30 = vadd.f32 %v518_v27, %v506_v26 }
  0xcf   :  { %v531_v34 = vpop.f32.mrf.mxu2  ;;  %v507_v37 = vpop.f32.mrf.mxu0 }
  0xd0   :  { %v532_v35 = vadd.f32 %v531_v34, %v519_v30  ;;  %v544_v36 = vpop.f32.mrf.mxu3  ;;  %v520_v38 = vpop.f32.mrf.mxu1 }
  0xd2   :  { %v545_v40 = vadd.f32 %v544_v36, %v532_v35 }
  0xd4   :  { %v549_v43 = vmax.f32 %v545_v40, 0.0 }
  0xd6   :  { %v560_v45 = vmul.f32 %v558_v42, %v549_v43 }
  0xd7   :  { %v533_v46 = vpop.f32.mrf.mxu2 }
  0xd8   :  { %v546_v47 = vpop.f32.mrf.mxu3  ;;  %v561_v48 = vadd.f32 %v560_v45, %v559_v44 }
  0xda   :  { %562 = vadd.xlane.f32.xlu0 %v561_v48 }
 0x14d   :  { %v563_v51 = vpop.xlane.xlu0 %562 }
 0x14e   :  { %v571_v52 = vadd.f32 %v570_v50, %v563_v51 }
 0x150   :  { %573 = vst.msk [vmem:[%s1029_s5] sm:$0xff] %vm568_vm0, %v571_v52 }
 0x157   :  { %v577_v54 = vld [vmem:[%s1029_s5] sm:$0xff] }
 0x158   :  { %v582_v55 = vadd.f32 %v914_v53, %v577_v54 }
 0x15a   :  { %v583_v56 = vmax.f32 %v582_v55, 0.0 }
 0x15c   :  { %584 = vst.msk [vmem:[%s1029_s5] sm:$0xff] %vm568_vm0, %v583_v56 }
 0x15d   :  { %589 = vsyncpa [#allocation4], 1 }

// kernel: net_without_ldl_and_cnn_forward.5
= control target key start
LH: loop header
LB: loop body
LE: loop exit
PB: predicated region body
PF: predicated region fallthrough
CT: control target
= control target key end

     0   :  { %8 = vsyncpa [#allocation3], 0  ;;  %s898_s15 = smov [#allocation2]   ;;  %s899_s17 = smov 128   ;;  %s952_s0 = inlined_call_operand.vmem [shape: bf16[8,512], index: 0, kind: input, shape index: {}]   ;;  %s953_s1 = inlined_call_operand.hbm [shape: bf16[512,256], index: 1, kind: input, shape index: {}]   ;;  %s954_s2 = inlined_call_operand.vmem [shape: f32[1,256], index: 2, kind: input, shape index: {}]   ;;  %s955_s3 = inlined_call_operand.vmem [shape: bf16[8,256], index: 3, kind: output, shape index: {}]  }
   0x1   :  { %s15_s14 = sshll.u32 %s953_s1, 4  ;;  %s17_s16 = sshll.u32 %s898_s15, 4  ;;  %s16_s14 = int_to_ptr.hbm [resolvable:$true] %s15_s14  ;;  %s18_s16 = int_to_ptr.vmem [resolvable:$true] %s17_s16 }
   0x2   :  { %s900_s18 = smov 8  }
   0x3   :  { %23 = dma.hbm_to_vmem [thread:$0]  %s16_s14, 8192, %s18_s16, [#allocation3], %s899_s17, %s899_s17, %s900_s18  }
   0x4   :  { %896 = dma.done.wait [#allocation3], 8192  }
   0x5   :  { %897 = vsyncadd [#allocation3], 4294959104  ;;  %v607_v0 = vld [vmem:[#allocation2 + $0x70] sm:$0xf]  ;;  %v820_v1 = vld [vmem:[#allocation2 + $0x74] sm:$0xf0] }
   0x6   :  { %v671_v2 = vld [vmem:[#allocation2 + $0xf0] sm:$0xf]  ;;  %v608_v3 = vor.u32 %v820_v1, %v607_v0  ;;  %v836_v4 = vld [vmem:[#allocation2 + $0xf4] sm:$0xf0]  ;;  %v599_v11 = vld [vmem:[#allocation2 + $0x60] sm:$0xf] }
   0x7   :  { %v735_v5 = vld [vmem:[#allocation2 + $0x170] sm:$0xf]  ;;  %v852_v6 = vld [vmem:[#allocation2 + $0x174] sm:$0xf0]  ;;  %v672_v7 = vor.u32 %v836_v4, %v671_v2  ;;  %v818_v13 = vld [vmem:[#allocation2 + $0x64] sm:$0xf0] }
   0x8   :  { %v736_v8 = vor.u32 %v852_v6, %v735_v5  ;;  %v799_v9 = vld [vmem:[#allocation2 + $0x1f0] sm:$0xf]  ;;  %v868_v10 = vld [vmem:[#allocation2 + $0x1f4] sm:$0xf0]  ;;  %436 = vmatpush.bf16.msra.mxu0 %v608_v3  ;;  %v663_v14 = vld [vmem:[#allocation2 + $0xe0] sm:$0xf]  ;;  %v600_v16 = vor.u32 %v818_v13, %v599_v11 }
   0x9   :  { %v800_v12 = vor.u32 %v868_v10, %v799_v9  ;;  %v834_v15 = vld [vmem:[#allocation2 + $0xe4] sm:$0xf0]  ;;  %449 = vmatpush.bf16.msra.mxu1 %v672_v7  ;;  %v727_v18 = vld [vmem:[#allocation2 + $0x160] sm:$0xf]  ;;  %v591_v23 = vld [vmem:[#allocation2 + $0x50] sm:$0xf] }
   0xa   :  { %462 = vmatpush.bf16.msra.mxu2 %v736_v8  ;;  %v664_v17 = vor.u32 %v834_v15, %v663_v14  ;;  %v850_v19 = vld [vmem:[#allocation2 + $0x164] sm:$0xf0]  ;;  %v791_v20 = vld [vmem:[#allocation2 + $0x1e0] sm:$0xf]  ;;  %v816_v24 = vld [vmem:[#allocation2 + $0x54] sm:$0xf0] }
   0xb   :  { %475 = vmatpush.bf16.msra.mxu3 %v800_v12  ;;  %v728_v21 = vor.u32 %v850_v19, %v727_v18  ;;  %v866_v22 = vld [vmem:[#allocation2 + $0x1e4] sm:$0xf0]  ;;  %v655_v26 = vld [vmem:[#allocation2 + $0xd0] sm:$0xf]  ;;  %v832_v27 = vld [vmem:[#allocation2 + $0xd4] sm:$0xf0]  ;;  %v592_v29 = vor.u32 %v816_v24, %v591_v23 }
   0xc   :  { %v792_v25 = vor.u32 %v866_v22, %v791_v20  ;;  %v719_v28 = vld [vmem:[#allocation2 + $0x150] sm:$0xf]  ;;  %437 = vmatpush.bf16.msra.mxu0 %v600_v16  ;;  %v848_v30 = vld [vmem:[#allocation2 + $0x154] sm:$0xf0]  ;;  %v656_v33 = vor.u32 %v832_v27, %v655_v26  ;;  %v583_v35 = vld [vmem:[#allocation2 + $0x40] sm:$0xf] }
   0xd   :  { %v783_v31 = vld [vmem:[#allocation2 + $0x1d0] sm:$0xf]  ;;  %v864_v32 = vld [vmem:[#allocation2 + $0x1d4] sm:$0xf0]  ;;  %450 = vmatpush.bf16.msra.mxu1 %v664_v17  ;;  %v720_v34 = vor.u32 %v848_v30, %v719_v28  ;;  %v814_v36 = vld [vmem:[#allocation2 + $0x44] sm:$0xf0] }
   0xe   :  { %463 = vmatpush.bf16.msra.mxu2 %v728_v21  ;;  %v647_v37 = vld [vmem:[#allocation2 + $0xc0] sm:$0xf]  ;;  %v784_v38 = vor.u32 %v864_v32, %v783_v31  ;;  %v830_v39 = vld [vmem:[#allocation2 + $0xc4] sm:$0xf0]  ;;  %v584_v44 = vor.u32 %v814_v36, %v583_v35  ;;  %v575_v47 = vld [vmem:[#allocation2 + $0x30] sm:$0xf] }
   0xf   :  { %476 = vmatpush.bf16.msra.mxu3 %v792_v25  ;;  %v711_v40 = vld [vmem:[#allocation2 + $0x140] sm:$0xf]  ;;  %v846_v41 = vld [vmem:[#allocation2 + $0x144] sm:$0xf0]  ;;  %v648_v45 = vor.u32 %v830_v39, %v647_v37  ;;  %v812_v48 = vld [vmem:[#allocation2 + $0x34] sm:$0xf0] }
  0x10   :  { %v775_v42 = vld [vmem:[#allocation2 + $0x1c0] sm:$0xf]  ;;  %v862_v43 = vld [vmem:[#allocation2 + $0x1c4] sm:$0xf0]  ;;  %438 = vmatpush.bf16.msra.mxu0 %v592_v29  ;;  %v712_v46 = vor.u32 %v846_v41, %v711_v40  ;;  %v639_v49 = vld [vmem:[#allocation2 + $0xb0] sm:$0xf]  ;;  %v576_v56 = vor.u32 %v812_v48, %v575_v47 }
  0x11   :  { %451 = vmatpush.bf16.msra.mxu1 %v656_v33  ;;  %v776_v50 = vor.u32 %v862_v43, %v775_v42  ;;  %v828_v51 = vld [vmem:[#allocation2 + $0xb4] sm:$0xf0]  ;;  %v703_v52 = vld [vmem:[#allocation2 + $0x130] sm:$0xf]  ;;  %v567_v59 = vld [vmem:[#allocation2 + $0x20] sm:$0xf] }
  0x12   :  { %464 = vmatpush.bf16.msra.mxu2 %v720_v34  ;;  %v844_v53 = vld [vmem:[#allocation2 + $0x134] sm:$0xf0]  ;;  %v767_v54 = vld [vmem:[#allocation2 + $0x1b0] sm:$0xf]  ;;  %v640_v57 = vor.u32 %v828_v51, %v639_v49  ;;  %v810_v60 = vld [vmem:[#allocation2 + $0x24] sm:$0xf0] }
  0x13   :  { %477 = vmatpush.bf16.msra.mxu3 %v784_v38  ;;  %v860_v55 = vld [vmem:[#allocation2 + $0x1b4] sm:$0xf0]  ;;  %v704_v58 = vor.u32 %v844_v53, %v703_v52  ;;  %v631_v61 = vld [vmem:[#allocation2 + $0xa0] sm:$0xf]  ;;  %v826_v63 = vld [vmem:[#allocation2 + $0xa4] sm:$0xf0]  ;;  %v568_v4 = vor.u32 %v810_v60, %v567_v59 }
  0x14   :  { %439 = vmatpush.bf16.msra.mxu0 %v584_v44  ;;  %v768_v62 = vor.u32 %v860_v55, %v767_v54  ;;  %v695_v0 = vld [vmem:[#allocation2 + $0x120] sm:$0xf]  ;;  %v842_v1 = vld [vmem:[#allocation2 + $0x124] sm:$0xf0]  ;;  %v632_v5 = vor.u32 %v826_v63, %v631_v61  ;;  %v559_v7 = vld [vmem:[#allocation2 + $0x10] sm:$0xf] }
  0x15   :  { %452 = vmatpush.bf16.msra.mxu1 %v648_v45  ;;  %v759_v2 = vld [vmem:[#allocation2 + $0x1a0] sm:$0xf]  ;;  %v858_v3 = vld [vmem:[#allocation2 + $0x1a4] sm:$0xf0]  ;;  %v696_v6 = vor.u32 %v842_v1, %v695_v0  ;;  %v808_v8 = vld [vmem:[#allocation2 + $0x14] sm:$0xf0] }
  0x16   :  { %465 = vmatpush.bf16.msra.mxu2 %v712_v46  ;;  %v623_v9 = vld [vmem:[#allocation2 + $0x90] sm:$0xf]  ;;  %v760_v10 = vor.u32 %v858_v3, %v759_v2  ;;  %v824_v11 = vld [vmem:[#allocation2 + $0x94] sm:$0xf0]  ;;  %v560_v16 = vor.u32 %v808_v8, %v559_v7  ;;  %v551_v17 = vld [vmem:[#allocation2] sm:$0xf] }
  0x17   :  { %478 = vmatpush.bf16.msra.mxu3 %v776_v50  ;;  %v687_v12 = vld [vmem:[#allocation2 + $0x110] sm:$0xf]  ;;  %v840_v13 = vld [vmem:[#allocation2 + $0x114] sm:$0xf0]  ;;  %v806_v18 = vld [vmem:[#allocation2 + $0x4] sm:$0xf0]  ;;  %v624_v20 = vor.u32 %v824_v11, %v623_v9 }
  0x18   :  { %440 = vmatpush.bf16.msra.mxu0 %v576_v56  ;;  %v751_v14 = vld [vmem:[#allocation2 + $0x190] sm:$0xf]  ;;  %v856_v15 = vld [vmem:[#allocation2 + $0x194] sm:$0xf0]  ;;  %v615_v19 = vld [vmem:[#allocation2 + $0x80] sm:$0xf]  ;;  %v688_v21 = vor.u32 %v840_v13, %v687_v12  ;;  %v552_v32 = vor.u32 %v806_v18, %v551_v17 }
  0x19   :  { %453 = vmatpush.bf16.msra.mxu1 %v640_v57  ;;  %v822_v22 = vld [vmem:[#allocation2 + $0x84] sm:$0xf0]  ;;  %v679_v23 = vld [vmem:[#allocation2 + $0x100] sm:$0xf]  ;;  %v752_v25 = vor.u32 %v856_v15, %v751_v14  ;;  %v819_v28 = vld [vmem:[#allocation2 + $0x74] sm:$0xf] }
  0x1a   :  { %466 = vmatpush.bf16.msra.mxu2 %v704_v58  ;;  %v838_v24 = vld [vmem:[#allocation2 + $0x104] sm:$0xf0]  ;;  %v743_v26 = vld [vmem:[#allocation2 + $0x180] sm:$0xf]  ;;  %v609_v29 = vld [vmem:[#allocation2 + $0x78] sm:$0xf0]  ;;  %v616_v37 = vor.u32 %v822_v22, %v615_v19 }
  0x1b   :  { %479 = vmatpush.bf16.msra.mxu3 %v768_v62  ;;  %v854_v27 = vld [vmem:[#allocation2 + $0x184] sm:$0xf0]  ;;  %v835_v30 = vld [vmem:[#allocation2 + $0xf4] sm:$0xf]  ;;  %v673_v33 = vld [vmem:[#allocation2 + $0xf8] sm:$0xf0]  ;;  %v680_v38 = vor.u32 %v838_v24, %v679_v23  ;;  %v612_v43 = vor.u32 %v819_v28, %v609_v29 }
  0x1c   :  { %441 = vmatpush.bf16.msra.mxu0 %v568_v4  ;;  %v31_v31 = vld [vmem:[%s952_s0 + $0x8] sm:$0xff]  ;;  %v851_v34 = vld [vmem:[#allocation2 + $0x174] sm:$0xf]  ;;  %v737_v35 = vld [vmem:[#allocation2 + $0x178] sm:$0xf0]  ;;  %v744_v42 = vor.u32 %v854_v27, %v743_v26  ;;  %v676_v45 = vor.u32 %v835_v30, %v673_v33 }
  0x1d   :  { %454 = vmatpush.bf16.msra.mxu1 %v632_v5  ;;  %v106_v36 = vunpack.c.l.b16 %v31_v31  ;;  %v867_v39 = vld [vmem:[#allocation2 + $0x1f4] sm:$0xf]  ;;  %v801_v40 = vld [vmem:[#allocation2 + $0x1f8] sm:$0xf0]  ;;  %v107_v41 = vunpack.c.h.b16 %v31_v31  ;;  %v30_v44 = vld [vmem:[%s952_s0] sm:$0xff]  ;;  %v740_v46 = vor.u32 %v851_v34, %v737_v35 }
  0x1e   :  { %467 = vmatpush.bf16.msra.mxu2 %v696_v6  ;;  %v817_v47 = vld [vmem:[#allocation2 + $0x64] sm:$0xf]  ;;  %v601_v48 = vld [vmem:[#allocation2 + $0x68] sm:$0xf0]  ;;  %v104_v50 = vunpack.c.l.b16 %v30_v44  ;;  %v105_v51 = vunpack.c.h.b16 %v30_v44  ;;  %v804_v52 = vor.u32 %v867_v39, %v801_v40  ;;  %v815_v1 = vld [vmem:[#allocation2 + $0x54] sm:$0xf] }
  0x1f   :  { %480 = vmatpush.bf16.msra.mxu3 %v760_v10  ;;  %v833_v49 = vld [vmem:[#allocation2 + $0xe4] sm:$0xf]  ;;  %v665_v53 = vld [vmem:[#allocation2 + $0xe8] sm:$0xf0]  ;;  %v930_v56 = vpack.c.b16 %v106_v36, %v106_v36  ;;  %v932_v59 = vpack.c.b16 %v107_v41, %v107_v41  ;;  %v604_v61 = vor.u32 %v817_v47, %v601_v48  ;;  %v593_v2 = vld [vmem:[#allocation2 + $0x58] sm:$0xf0] }
  0x20   :  { %442 = vmatpush.bf16.msra.mxu0 %v560_v16  ;;  %v849_v54 = vld [vmem:[#allocation2 + $0x164] sm:$0xf]  ;;  %v729_v55 = vld [vmem:[#allocation2 + $0x168] sm:$0xf0]  ;;  %v934_v60 = vpack.c.b16 %v104_v50, %v104_v50  ;;  %v936_v62 = vpack.c.b16 %v105_v51, %v105_v51  ;;  %v668_v63 = vor.u32 %v833_v49, %v665_v53  ;;  %v831_v3 = vld [vmem:[#allocation2 + $0xd4] sm:$0xf]  ;;  %v596_v10 = vor.u32 %v815_v1, %v593_v2 }
  0x21   :  { %455 = vmatpush.bf16.msra.mxu1 %v624_v20  ;;  %v865_v57 = vld [vmem:[#allocation2 + $0x1e4] sm:$0xf]  ;;  %v793_v58 = vld [vmem:[#allocation2 + $0x1e8] sm:$0xf0]  ;;  %v732_v0 = vor.u32 %v849_v54, %v729_v55  ;;  %v657_v5 = vld [vmem:[#allocation2 + $0xd8] sm:$0xf0] }
  0x22   :  { %468 = vmatpush.bf16.msra.mxu2 %v688_v21  ;;  %v796_v4 = vor.u32 %v865_v57, %v793_v58  ;;  %v847_v6 = vld [vmem:[#allocation2 + $0x154] sm:$0xf]  ;;  %v721_v7 = vld [vmem:[#allocation2 + $0x158] sm:$0xf0]  ;;  %v660_v11 = vor.u32 %v831_v3, %v657_v5  ;;  %v813_v13 = vld [vmem:[#allocation2 + $0x44] sm:$0xf] }
  0x23   :  { %481 = vmatpush.bf16.msra.mxu3 %v752_v25  ;;  %v863_v8 = vld [vmem:[#allocation2 + $0x1d4] sm:$0xf]  ;;  %v785_v9 = vld [vmem:[#allocation2 + $0x1d8] sm:$0xf0]  ;;  %v724_v12 = vor.u32 %v847_v6, %v721_v7  ;;  %v585_v14 = vld [vmem:[#allocation2 + $0x48] sm:$0xf0] }
  0x24   :  { %443 = vmatpush.bf16.msra.mxu0 %v552_v32  ;;  %v829_v15 = vld [vmem:[#allocation2 + $0xc4] sm:$0xf]  ;;  %v788_v16 = vor.u32 %v863_v8, %v785_v9  ;;  %v649_v17 = vld [vmem:[#allocation2 + $0xc8] sm:$0xf0]  ;;  %v588_v22 = vor.u32 %v813_v13, %v585_v14  ;;  %v811_v25 = vld [vmem:[#allocation2 + $0x34] sm:$0xf] }
  0x25   :  { %456 = vmatpush.bf16.msra.mxu1 %v616_v37  ;;  %v845_v18 = vld [vmem:[#allocation2 + $0x144] sm:$0xf]  ;;  %v713_v19 = vld [vmem:[#allocation2 + $0x148] sm:$0xf0]  ;;  %v652_v23 = vor.u32 %v829_v15, %v649_v17  ;;  %v577_v26 = vld [vmem:[#allocation2 + $0x38] sm:$0xf0] }
  0x26   :  { %469 = vmatpush.bf16.msra.mxu2 %v680_v38  ;;  %v861_v20 = vld [vmem:[#allocation2 + $0x1c4] sm:$0xf]  ;;  %v777_v21 = vld [vmem:[#allocation2 + $0x1c8] sm:$0xf0]  ;;  %v716_v24 = vor.u32 %v845_v18, %v713_v19  ;;  %v827_v27 = vld [vmem:[#allocation2 + $0xb4] sm:$0xf]  ;;  %v580_v34 = vor.u32 %v811_v25, %v577_v26 }
  0x27   :  { %482 = vmatpush.bf16.msra.mxu3 %v744_v42  ;;  %444 = vmatmul.bf16.vlgmr.msra.gmra.mxu0 %v934_v60  ;;  %v780_v28 = vor.u32 %v861_v20, %v777_v21  ;;  %v641_v29 = vld [vmem:[#allocation2 + $0xb8] sm:$0xf0]  ;;  %v843_v30 = vld [vmem:[#allocation2 + $0x134] sm:$0xf]  ;;  %v809_v37 = vld [vmem:[#allocation2 + $0x24] sm:$0xf] }
  0x28   :  { %488 = vmatpush.bf16.msrb.mxu0 %v612_v43  ;;  %457 = vmatmul.bf16.vlgmr.msra.gmra.mxu1 %v936_v62  ;;  %v705_v31 = vld [vmem:[#allocation2 + $0x138] sm:$0xf0]  ;;  %v859_v32 = vld [vmem:[#allocation2 + $0x1b4] sm:$0xf]  ;;  %v644_v35 = vor.u32 %v827_v27, %v641_v29  ;;  %v569_v38 = vld [vmem:[#allocation2 + $0x28] sm:$0xf0] }
  0x29   :  { %501 = vmatpush.bf16.msrb.mxu1 %v676_v45  ;;  %470 = vmatmul.bf16.vlgmr.msra.gmra.mxu2 %v930_v56  ;;  %v769_v33 = vld [vmem:[#allocation2 + $0x1b8] sm:$0xf0]  ;;  %v708_v36 = vor.u32 %v843_v30, %v705_v31  ;;  %v825_v39 = vld [vmem:[#allocation2 + $0xa4] sm:$0xf]  ;;  %v633_v41 = vld [vmem:[#allocation2 + $0xa8] sm:$0xf0] }
  0x2a   :  { %514 = vmatpush.bf16.msrb.mxu2 %v740_v46  ;;  %483 = vmatmul.bf16.vlgmr.msra.gmra.mxu3 %v932_v59  ;;  %v772_v40 = vor.u32 %v859_v32, %v769_v33  ;;  %v841_v42 = vld [vmem:[#allocation2 + $0x124] sm:$0xf]  ;;  %v697_v43 = vld [vmem:[#allocation2 + $0x128] sm:$0xf0]  ;;  %v572_v46 = vor.u32 %v809_v37, %v569_v38  ;;  %v636_v47 = vor.u32 %v825_v39, %v633_v41  ;;  %v807_v49 = vld [vmem:[#allocation2 + $0x14] sm:$0xf] }
  0x2b   :  { %527 = vmatpush.bf16.msrb.mxu3 %v804_v52  ;;  %v857_v44 = vld [vmem:[#allocation2 + $0x1a4] sm:$0xf]  ;;  %v761_v45 = vld [vmem:[#allocation2 + $0x1a8] sm:$0xf0]  ;;  %v700_v48 = vor.u32 %v841_v42, %v697_v43  ;;  %v561_v50 = vld [vmem:[#allocation2 + $0x18] sm:$0xf0] }
  0x2c   :  { %489 = vmatpush.bf16.msrb.mxu0 %v604_v61  ;;  %v823_v51 = vld [vmem:[#allocation2 + $0x94] sm:$0xf]  ;;  %v764_v52 = vor.u32 %v857_v44, %v761_v45  ;;  %v625_v53 = vld [vmem:[#allocation2 + $0x98] sm:$0xf0]  ;;  %v564_v61 = vor.u32 %v807_v49, %v561_v50  ;;  %v805_v1 = vld [vmem:[#allocation2 + $0x4] sm:$0xf] }
  0x2d   :  { %502 = vmatpush.bf16.msrb.mxu1 %v668_v63  ;;  %v839_v54 = vld [vmem:[#allocation2 + $0x114] sm:$0xf]  ;;  %v689_v55 = vld [vmem:[#allocation2 + $0x118] sm:$0xf0]  ;;  %v628_v63 = vor.u32 %v823_v51, %v625_v53  ;;  %v553_v2 = vld [vmem:[#allocation2 + $0x8] sm:$0xf0] }
  0x2e   :  { %515 = vmatpush.bf16.msrb.mxu2 %v732_v0  ;;  %v855_v57 = vld [vmem:[#allocation2 + $0x194] sm:$0xf]  ;;  %v753_v58 = vld [vmem:[#allocation2 + $0x198] sm:$0xf0]  ;;  %v692_v0 = vor.u32 %v839_v54, %v689_v55  ;;  %v821_v3 = vld [vmem:[#allocation2 + $0x84] sm:$0xf] }
  0x2f   :  { %528 = vmatpush.bf16.msrb.mxu3 %v796_v4  ;;  %v756_v4 = vor.u32 %v855_v57, %v753_v58  ;;  %v617_v5 = vld [vmem:[#allocation2 + $0x88] sm:$0xf0]  ;;  %v837_v6 = vld [vmem:[#allocation2 + $0x104] sm:$0xf] }
  0x30   :  { %490 = vmatpush.bf16.msrb.mxu0 %v596_v10  ;;  %v681_v7 = vld [vmem:[#allocation2 + $0x108] sm:$0xf0]  ;;  %v853_v8 = vld [vmem:[#allocation2 + $0x184] sm:$0xf]  ;;  %v556_v10 = vor.u32 %v805_v1, %v553_v2 }
  0x31   :  { %503 = vmatpush.bf16.msrb.mxu1 %v660_v11  ;;  %v745_v9 = vld [vmem:[#allocation2 + $0x188] sm:$0xf0]  ;;  %v620_v11 = vor.u32 %v821_v3, %v617_v5 }
  0x32   :  { %516 = vmatpush.bf16.msrb.mxu2 %v724_v12  ;;  %v684_v12 = vor.u32 %v837_v6, %v681_v7  ;;  %v748_v13 = vor.u32 %v853_v8, %v745_v9 }
  0x33   :  { %529 = vmatpush.bf16.msrb.mxu3 %v788_v16 }
  0x34   :  { %491 = vmatpush.bf16.msrb.mxu0 %v588_v22  ;;  %v96_v22 = vld [vmem:[%s954_s2] sm:$0x3] }
  0x35   :  { %504 = vmatpush.bf16.msrb.mxu1 %v652_v23  ;;  %v98_v23 = vperm.slane %v96_v22, 0 }
  0x36   :  { %517 = vmatpush.bf16.msrb.mxu2 %v716_v24  ;;  %v99_v24 = vperm.slane %v96_v22, 1 }
  0x37   :  { %530 = vmatpush.bf16.msrb.mxu3 %v780_v28 }
  0x38   :  { %492 = vmatpush.bf16.msrb.mxu0 %v580_v34 }
  0x39   :  { %505 = vmatpush.bf16.msrb.mxu1 %v644_v35 }
  0x3a   :  { %518 = vmatpush.bf16.msrb.mxu2 %v708_v36 }
  0x3b   :  { %531 = vmatpush.bf16.msrb.mxu3 %v772_v40 }
  0x3c   :  { %493 = vmatpush.bf16.msrb.mxu0 %v572_v46 }
  0x3d   :  { %506 = vmatpush.bf16.msrb.mxu1 %v636_v47 }
  0x3e   :  { %519 = vmatpush.bf16.msrb.mxu2 %v700_v48 }
  0x3f   :  { %532 = vmatpush.bf16.msrb.mxu3 %v764_v52 }
  0x40   :  { %494 = vmatpush.bf16.msrb.mxu0 %v564_v61 }
  0x41   :  { %507 = vmatpush.bf16.msrb.mxu1 %v628_v63 }
  0x42   :  { %520 = vmatpush.bf16.msrb.mxu2 %v692_v0 }
  0x43   :  { %533 = vmatpush.bf16.msrb.mxu3 %v756_v4 }
  0x44   :  { %495 = vmatpush.bf16.msrb.mxu0 %v556_v10 }
  0x45   :  { %508 = vmatpush.bf16.msrb.mxu1 %v620_v11 }
  0x46   :  { %521 = vmatpush.bf16.msrb.mxu2 %v684_v12 }
  0x47   :  { %534 = vmatpush.bf16.msrb.mxu3 %v748_v13  ;;  %496 = vmatmul.bf16.vlgmr.msrb.gmra.mxu0 %v934_v60 }
  0x48   :  { %509 = vmatmul.bf16.vlgmr.msrb.gmra.mxu1 %v936_v62 }
  0x49   :  { %522 = vmatmul.bf16.vlgmr.msrb.gmra.mxu2 %v930_v56 }
  0x4a   :  { %535 = vmatmul.bf16.vlgmr.msrb.gmra.mxu3 %v932_v59 }
  0xa4   :  { %v445_v14 = vpop.f32.mrf.mxu0 }
  0xa5   :  { %v458_v15 = vpop.f32.mrf.mxu1  ;;  %v446_v60 = vadd.f32 %v445_v14, %v98_v23 }
  0xa7   :  { %v459_v62 = vadd.f32 %v458_v15, %v446_v60 }
  0xac   :  { %v471_v16 = vpop.f32.mrf.mxu2  ;;  %v447_v18 = vpop.f32.mrf.mxu0 }
  0xad   :  { %v484_v17 = vpop.f32.mrf.mxu3  ;;  %v460_v19 = vpop.f32.mrf.mxu1  ;;  %v472_v59 = vadd.f32 %v471_v16, %v459_v62 }
  0xaf   :  { %v485_v29 = vadd.f32 %v484_v17, %v472_v59 }
  0xb1   :  { %v540_v35 = vmax.f32 %v485_v29, 0.0 }
  0xb4   :  { %v473_v20 = vpop.f32.mrf.mxu2 }
  0xb5   :  { %v486_v21 = vpop.f32.mrf.mxu3 }
  0xc4   :  { %v497_v25 = vpop.f32.mrf.mxu0 }
  0xc5   :  { %v498_v56 = vadd.f32 %v497_v25, %v99_v24  ;;  %v510_v26 = vpop.f32.mrf.mxu1 }
  0xc7   :  { %v511_v27 = vadd.f32 %v510_v26, %v498_v56 }
  0xcc   :  { %v523_v28 = vpop.f32.mrf.mxu2  ;;  %v499_v32 = vpop.f32.mrf.mxu0 }
  0xcd   :  { %v524_v30 = vadd.f32 %v523_v28, %v511_v27  ;;  %v536_v31 = vpop.f32.mrf.mxu3  ;;  %v512_v33 = vpop.f32.mrf.mxu1 }
  0xcf   :  { %v537_v34 = vadd.f32 %v536_v31, %v524_v30 }
  0xd1   :  { %v541_v36 = vmax.f32 %v537_v34, 0.0 }
  0xd3   :  { %v542_v37 = vpack.c.bf16 %v541_v36, %v540_v35 }
  0xd4   :  { %v525_v38 = vpop.f32.mrf.mxu2 }
  0xd5   :  { %543 = vst [vmem:[%s955_s3] sm:$0xff] %v542_v37  ;;  %v538_v39 = vpop.f32.mrf.mxu3 }
  0xd6   :  { %548 = vsyncpa [#allocation3], 1 }

// kernel: net_without_ldl_and_cnn_forward.6
= control target key start
LH: loop header
LB: loop body
LE: loop exit
PB: predicated region body
PF: predicated region fallthrough
CT: control target
= control target key end

     0   :  { %8 = vsyncpa [#allocation3], 0  ;;  %s898_s15 = smov [#allocation2]   ;;  %s899_s17 = smov 256   ;;  %s948_s0 = inlined_call_operand.vmem [shape: bf16[8,256], index: 0, kind: input, shape index: {}]   ;;  %s949_s1 = inlined_call_operand.hbm [shape: bf16[256,512], index: 1, kind: input, shape index: {}]   ;;  %s950_s2 = inlined_call_operand.vmem [shape: f32[1,512], index: 2, kind: input, shape index: {}]   ;;  %s951_s3 = inlined_call_operand.vmem [shape: bf16[8,512], index: 3, kind: output, shape index: {}]  }
   0x1   :  { %s15_s14 = sshll.u32 %s949_s1, 4  ;;  %s17_s16 = sshll.u32 %s898_s15, 4  ;;  %s16_s14 = int_to_ptr.hbm [resolvable:$true] %s15_s14  ;;  %s18_s16 = int_to_ptr.vmem [resolvable:$true] %s17_s16 }
   0x2   :  { %s900_s18 = smov 16  }
   0x3   :  { %23 = dma.hbm_to_vmem [thread:$0]  %s16_s14, 8192, %s18_s16, [#allocation3], %s899_s17, %s899_s17, %s900_s18  }
   0x4   :  { %896 = dma.done.wait [#allocation3], 8192  }
   0x5   :  { %897 = vsyncadd [#allocation3], 4294959104  ;;  %v663_v0 = vld [vmem:[#allocation2 + $0xe0] sm:$0xf]  ;;  %v835_v1 = vld [vmem:[#allocation2 + $0xec] sm:$0xf0] }
   0x6   :  { %v791_v2 = vld [vmem:[#allocation2 + $0x1e0] sm:$0xf]  ;;  %v664_v3 = vor.u32 %v835_v1, %v663_v0  ;;  %v867_v4 = vld [vmem:[#allocation2 + $0x1ec] sm:$0xf0]  ;;  %v833_v5 = vld [vmem:[#allocation2 + $0xe4] sm:$0xf] }
   0x7   :  { %v665_v6 = vld [vmem:[#allocation2 + $0xf0] sm:$0xf0]  ;;  %v792_v7 = vor.u32 %v867_v4, %v791_v2  ;;  %v865_v9 = vld [vmem:[#allocation2 + $0x1e4] sm:$0xf]  ;;  %v647_v11 = vld [vmem:[#allocation2 + $0xc0] sm:$0xf] }
   0x8   :  { %v668_v8 = vor.u32 %v833_v5, %v665_v6  ;;  %v793_v10 = vld [vmem:[#allocation2 + $0x1f0] sm:$0xf0]  ;;  %432 = vmatpush.bf16.msra.mxu0 %v664_v3  ;;  %v831_v13 = vld [vmem:[#allocation2 + $0xcc] sm:$0xf0]  ;;  %v775_v14 = vld [vmem:[#allocation2 + $0x1c0] sm:$0xf] }
   0x9   :  { %v796_v12 = vor.u32 %v865_v9, %v793_v10  ;;  %v863_v15 = vld [vmem:[#allocation2 + $0x1cc] sm:$0xf0]  ;;  %445 = vmatpush.bf16.msra.mxu1 %v792_v7  ;;  %v648_v16 = vor.u32 %v831_v13, %v647_v11  ;;  %v829_v18 = vld [vmem:[#allocation2 + $0xc4] sm:$0xf]  ;;  %v649_v19 = vld [vmem:[#allocation2 + $0xd0] sm:$0xf0] }
   0xa   :  { %458 = vmatpush.bf16.msra.mxu2 %v668_v8  ;;  %v776_v17 = vor.u32 %v863_v15, %v775_v14  ;;  %v861_v20 = vld [vmem:[#allocation2 + $0x1c4] sm:$0xf]  ;;  %v652_v21 = vor.u32 %v829_v18, %v649_v19  ;;  %v777_v22 = vld [vmem:[#allocation2 + $0x1d0] sm:$0xf0]  ;;  %v631_v23 = vld [vmem:[#allocation2 + $0xa0] sm:$0xf] }
   0xb   :  { %471 = vmatpush.bf16.msra.mxu3 %v796_v12  ;;  %v827_v24 = vld [vmem:[#allocation2 + $0xac] sm:$0xf0]  ;;  %v780_v25 = vor.u32 %v861_v20, %v777_v22  ;;  %v759_v26 = vld [vmem:[#allocation2 + $0x1a0] sm:$0xf]  ;;  %v825_v28 = vld [vmem:[#allocation2 + $0xa4] sm:$0xf] }
   0xc   :  { %v859_v27 = vld [vmem:[#allocation2 + $0x1ac] sm:$0xf0]  ;;  %433 = vmatpush.bf16.msra.mxu0 %v648_v16  ;;  %v632_v29 = vor.u32 %v827_v24, %v631_v23  ;;  %v633_v30 = vld [vmem:[#allocation2 + $0xb0] sm:$0xf0]  ;;  %v857_v31 = vld [vmem:[#allocation2 + $0x1a4] sm:$0xf] }
   0xd   :  { %v761_v32 = vld [vmem:[#allocation2 + $0x1b0] sm:$0xf0]  ;;  %446 = vmatpush.bf16.msra.mxu1 %v776_v17  ;;  %v760_v33 = vor.u32 %v859_v27, %v759_v26  ;;  %v636_v34 = vor.u32 %v825_v28, %v633_v30  ;;  %v615_v35 = vld [vmem:[#allocation2 + $0x80] sm:$0xf]  ;;  %v823_v36 = vld [vmem:[#allocation2 + $0x8c] sm:$0xf0] }
   0xe   :  { %459 = vmatpush.bf16.msra.mxu2 %v652_v21  ;;  %v743_v37 = vld [vmem:[#allocation2 + $0x180] sm:$0xf]  ;;  %v764_v38 = vor.u32 %v857_v31, %v761_v32  ;;  %v855_v39 = vld [vmem:[#allocation2 + $0x18c] sm:$0xf0]  ;;  %v821_v40 = vld [vmem:[#allocation2 + $0x84] sm:$0xf]  ;;  %v616_v44 = vor.u32 %v823_v36, %v615_v35 }
   0xf   :  { %472 = vmatpush.bf16.msra.mxu3 %v780_v25  ;;  %v617_v41 = vld [vmem:[#allocation2 + $0x90] sm:$0xf0]  ;;  %v853_v42 = vld [vmem:[#allocation2 + $0x184] sm:$0xf]  ;;  %v744_v45 = vor.u32 %v855_v39, %v743_v37  ;;  %v599_v47 = vld [vmem:[#allocation2 + $0x60] sm:$0xf] }
  0x10   :  { %v745_v43 = vld [vmem:[#allocation2 + $0x190] sm:$0xf0]  ;;  %434 = vmatpush.bf16.msra.mxu0 %v632_v29  ;;  %v620_v46 = vor.u32 %v821_v40, %v617_v41  ;;  %v819_v48 = vld [vmem:[#allocation2 + $0x6c] sm:$0xf0]  ;;  %v727_v49 = vld [vmem:[#allocation2 + $0x160] sm:$0xf] }
  0x11   :  { %447 = vmatpush.bf16.msra.mxu1 %v760_v33  ;;  %v748_v50 = vor.u32 %v853_v42, %v745_v43  ;;  %v851_v51 = vld [vmem:[#allocation2 + $0x16c] sm:$0xf0]  ;;  %v817_v52 = vld [vmem:[#allocation2 + $0x64] sm:$0xf]  ;;  %v601_v53 = vld [vmem:[#allocation2 + $0x70] sm:$0xf0]  ;;  %v600_v56 = vor.u32 %v819_v48, %v599_v47 }
  0x12   :  { %460 = vmatpush.bf16.msra.mxu2 %v636_v34  ;;  %v849_v54 = vld [vmem:[#allocation2 + $0x164] sm:$0xf]  ;;  %v729_v55 = vld [vmem:[#allocation2 + $0x170] sm:$0xf0]  ;;  %v728_v57 = vor.u32 %v851_v51, %v727_v49  ;;  %v604_v58 = vor.u32 %v817_v52, %v601_v53  ;;  %v583_v59 = vld [vmem:[#allocation2 + $0x40] sm:$0xf] }
  0x13   :  { %473 = vmatpush.bf16.msra.mxu3 %v764_v38  ;;  %v815_v60 = vld [vmem:[#allocation2 + $0x4c] sm:$0xf0]  ;;  %v711_v61 = vld [vmem:[#allocation2 + $0x140] sm:$0xf]  ;;  %v732_v62 = vor.u32 %v849_v54, %v729_v55  ;;  %v813_v0 = vld [vmem:[#allocation2 + $0x44] sm:$0xf] }
  0x14   :  { %435 = vmatpush.bf16.msra.mxu0 %v616_v44  ;;  %v847_v63 = vld [vmem:[#allocation2 + $0x14c] sm:$0xf0]  ;;  %v585_v1 = vld [vmem:[#allocation2 + $0x50] sm:$0xf0]  ;;  %v845_v2 = vld [vmem:[#allocation2 + $0x144] sm:$0xf]  ;;  %v584_v4 = vor.u32 %v815_v60, %v583_v59 }
  0x15   :  { %448 = vmatpush.bf16.msra.mxu1 %v744_v45  ;;  %v713_v3 = vld [vmem:[#allocation2 + $0x150] sm:$0xf0]  ;;  %v712_v5 = vor.u32 %v847_v63, %v711_v61  ;;  %v588_v6 = vor.u32 %v813_v0, %v585_v1  ;;  %v567_v7 = vld [vmem:[#allocation2 + $0x20] sm:$0xf]  ;;  %v811_v8 = vld [vmem:[#allocation2 + $0x2c] sm:$0xf0] }
  0x16   :  { %461 = vmatpush.bf16.msra.mxu2 %v620_v46  ;;  %v695_v9 = vld [vmem:[#allocation2 + $0x120] sm:$0xf]  ;;  %v716_v10 = vor.u32 %v845_v2, %v713_v3  ;;  %v843_v11 = vld [vmem:[#allocation2 + $0x12c] sm:$0xf0]  ;;  %v809_v12 = vld [vmem:[#allocation2 + $0x24] sm:$0xf]  ;;  %v568_v16 = vor.u32 %v811_v8, %v567_v7 }
  0x17   :  { %474 = vmatpush.bf16.msra.mxu3 %v748_v50  ;;  %v569_v13 = vld [vmem:[#allocation2 + $0x30] sm:$0xf0]  ;;  %v841_v14 = vld [vmem:[#allocation2 + $0x124] sm:$0xf]  ;;  %v551_v17 = vld [vmem:[#allocation2] sm:$0xf]  ;;  %v696_v20 = vor.u32 %v843_v11, %v695_v9 }
  0x18   :  { %436 = vmatpush.bf16.msra.mxu0 %v600_v56  ;;  %v697_v15 = vld [vmem:[#allocation2 + $0x130] sm:$0xf0]  ;;  %v807_v18 = vld [vmem:[#allocation2 + $0xc] sm:$0xf0]  ;;  %v679_v19 = vld [vmem:[#allocation2 + $0x100] sm:$0xf]  ;;  %v572_v21 = vor.u32 %v809_v12, %v569_v13 }
  0x19   :  { %449 = vmatpush.bf16.msra.mxu1 %v728_v57  ;;  %v839_v22 = vld [vmem:[#allocation2 + $0x10c] sm:$0xf0]  ;;  %v805_v23 = vld [vmem:[#allocation2 + $0x4] sm:$0xf]  ;;  %v553_v24 = vld [vmem:[#allocation2 + $0x10] sm:$0xf0]  ;;  %v700_v25 = vor.u32 %v841_v14, %v697_v15  ;;  %v552_v32 = vor.u32 %v807_v18, %v551_v17 }
  0x1a   :  { %462 = vmatpush.bf16.msra.mxu2 %v604_v58  ;;  %v837_v26 = vld [vmem:[#allocation2 + $0x104] sm:$0xf]  ;;  %v681_v27 = vld [vmem:[#allocation2 + $0x110] sm:$0xf0]  ;;  %v671_v28 = vld [vmem:[#allocation2 + $0xe8] sm:$0xf]  ;;  %v680_v37 = vor.u32 %v839_v22, %v679_v19  ;;  %v556_v38 = vor.u32 %v805_v23, %v553_v24 }
  0x1b   :  { %475 = vmatpush.bf16.msra.mxu3 %v732_v62  ;;  %v836_v29 = vld [vmem:[#allocation2 + $0xf4] sm:$0xf0]  ;;  %v799_v30 = vld [vmem:[#allocation2 + $0x1e8] sm:$0xf]  ;;  %v30_v31 = vld [vmem:[%s948_s0] sm:$0xff]  ;;  %v684_v42 = vor.u32 %v837_v26, %v681_v27 }
  0x1c   :  { %437 = vmatpush.bf16.msra.mxu0 %v584_v4  ;;  %v868_v33 = vld [vmem:[#allocation2 + $0x1f4] sm:$0xf0]  ;;  %v834_v34 = vld [vmem:[#allocation2 + $0xec] sm:$0xf]  ;;  %v673_v35 = vld [vmem:[#allocation2 + $0xf8] sm:$0xf0]  ;;  %v106_v36 = vunpack.c.l.b16 %v30_v31  ;;  %v107_v41 = vunpack.c.h.b16 %v30_v31  ;;  %v672_v43 = vor.u32 %v836_v29, %v671_v28 }
  0x1d   :  { %450 = vmatpush.bf16.msra.mxu1 %v712_v5  ;;  %v866_v39 = vld [vmem:[#allocation2 + $0x1ec] sm:$0xf]  ;;  %v801_v40 = vld [vmem:[#allocation2 + $0x1f8] sm:$0xf0]  ;;  %v800_v44 = vor.u32 %v868_v33, %v799_v30  ;;  %v676_v45 = vor.u32 %v834_v34, %v673_v35  ;;  %v655_v46 = vld [vmem:[#allocation2 + $0xc8] sm:$0xf] }
  0x1e   :  { %463 = vmatpush.bf16.msra.mxu2 %v588_v6  ;;  %v832_v47 = vld [vmem:[#allocation2 + $0xd4] sm:$0xf0]  ;;  %v783_v48 = vld [vmem:[#allocation2 + $0x1c8] sm:$0xf]  ;;  %v804_v49 = vor.u32 %v866_v39, %v801_v40  ;;  %v830_v51 = vld [vmem:[#allocation2 + $0xcc] sm:$0xf]  ;;  %v927_v53 = vpack.c.b16 %v106_v36, %v106_v36  ;;  %v929_v56 = vpack.c.b16 %v107_v41, %v107_v41 }
  0x1f   :  { %476 = vmatpush.bf16.msra.mxu3 %v716_v10  ;;  %v864_v50 = vld [vmem:[#allocation2 + $0x1d4] sm:$0xf0]  ;;  %v657_v52 = vld [vmem:[#allocation2 + $0xd8] sm:$0xf0]  ;;  %v862_v54 = vld [vmem:[#allocation2 + $0x1cc] sm:$0xf]  ;;  %v656_v57 = vor.u32 %v832_v47, %v655_v46 }
  0x20   :  { %438 = vmatpush.bf16.msra.mxu0 %v568_v16  ;;  %v785_v55 = vld [vmem:[#allocation2 + $0x1d8] sm:$0xf0]  ;;  %v784_v58 = vor.u32 %v864_v50, %v783_v48  ;;  %v660_v59 = vor.u32 %v830_v51, %v657_v52  ;;  %v639_v60 = vld [vmem:[#allocation2 + $0xa8] sm:$0xf]  ;;  %v828_v61 = vld [vmem:[#allocation2 + $0xb4] sm:$0xf0] }
  0x21   :  { %451 = vmatpush.bf16.msra.mxu1 %v696_v20  ;;  %v767_v62 = vld [vmem:[#allocation2 + $0x1a8] sm:$0xf]  ;;  %v788_v63 = vor.u32 %v862_v54, %v785_v55  ;;  %v860_v0 = vld [vmem:[#allocation2 + $0x1b4] sm:$0xf0]  ;;  %v826_v1 = vld [vmem:[#allocation2 + $0xac] sm:$0xf]  ;;  %v640_v5 = vor.u32 %v828_v61, %v639_v60 }
  0x22   :  { %464 = vmatpush.bf16.msra.mxu2 %v572_v21  ;;  %v641_v2 = vld [vmem:[#allocation2 + $0xb8] sm:$0xf0]  ;;  %v858_v3 = vld [vmem:[#allocation2 + $0x1ac] sm:$0xf]  ;;  %v768_v6 = vor.u32 %v860_v0, %v767_v62  ;;  %v623_v8 = vld [vmem:[#allocation2 + $0x88] sm:$0xf] }
  0x23   :  { %477 = vmatpush.bf16.msra.mxu3 %v700_v25  ;;  %v769_v4 = vld [vmem:[#allocation2 + $0x1b8] sm:$0xf0]  ;;  %v644_v7 = vor.u32 %v826_v1, %v641_v2  ;;  %v824_v9 = vld [vmem:[#allocation2 + $0x94] sm:$0xf0]  ;;  %v751_v10 = vld [vmem:[#allocation2 + $0x188] sm:$0xf] }
  0x24   :  { %439 = vmatpush.bf16.msra.mxu0 %v552_v32  ;;  %v772_v11 = vor.u32 %v858_v3, %v769_v4  ;;  %v856_v12 = vld [vmem:[#allocation2 + $0x194] sm:$0xf0]  ;;  %v822_v13 = vld [vmem:[#allocation2 + $0x8c] sm:$0xf]  ;;  %v625_v14 = vld [vmem:[#allocation2 + $0x98] sm:$0xf0]  ;;  %v624_v17 = vor.u32 %v824_v9, %v623_v8 }
  0x25   :  { %452 = vmatpush.bf16.msra.mxu1 %v680_v37  ;;  %v854_v15 = vld [vmem:[#allocation2 + $0x18c] sm:$0xf]  ;;  %v753_v16 = vld [vmem:[#allocation2 + $0x198] sm:$0xf0]  ;;  %v752_v18 = vor.u32 %v856_v12, %v751_v10  ;;  %v628_v19 = vor.u32 %v822_v13, %v625_v14  ;;  %v607_v20 = vld [vmem:[#allocation2 + $0x68] sm:$0xf] }
  0x26   :  { %465 = vmatpush.bf16.msra.mxu2 %v556_v38  ;;  %v820_v21 = vld [vmem:[#allocation2 + $0x74] sm:$0xf0]  ;;  %v735_v22 = vld [vmem:[#allocation2 + $0x168] sm:$0xf]  ;;  %v756_v23 = vor.u32 %v854_v15, %v753_v16  ;;  %v818_v25 = vld [vmem:[#allocation2 + $0x6c] sm:$0xf] }
  0x27   :  { %478 = vmatpush.bf16.msra.mxu3 %v684_v42  ;;  %440 = vmatmul.bf16.vlgmr.msra.gmra.mxu0 %v927_v53  ;;  %v852_v24 = vld [vmem:[#allocation2 + $0x174] sm:$0xf0]  ;;  %v609_v26 = vld [vmem:[#allocation2 + $0x78] sm:$0xf0]  ;;  %v850_v27 = vld [vmem:[#allocation2 + $0x16c] sm:$0xf]  ;;  %v608_v29 = vor.u32 %v820_v21, %v607_v20 }
  0x28   :  { %484 = vmatpush.bf16.msrb.mxu0 %v672_v43  ;;  %453 = vmatmul.bf16.vlgmr.msra.gmra.mxu1 %v929_v56  ;;  %v737_v28 = vld [vmem:[#allocation2 + $0x178] sm:$0xf0]  ;;  %v736_v30 = vor.u32 %v852_v24, %v735_v22  ;;  %v612_v31 = vor.u32 %v818_v25, %v609_v26  ;;  %v591_v32 = vld [vmem:[#allocation2 + $0x48] sm:$0xf]  ;;  %v816_v33 = vld [vmem:[#allocation2 + $0x54] sm:$0xf0] }
  0x29   :  { %497 = vmatpush.bf16.msrb.mxu1 %v800_v44  ;;  %466 = vmatmul.bf16.vlgmr.msra.gmra.mxu2 %v927_v53  ;;  %v719_v34 = vld [vmem:[#allocation2 + $0x148] sm:$0xf]  ;;  %v740_v35 = vor.u32 %v850_v27, %v737_v28  ;;  %v848_v36 = vld [vmem:[#allocation2 + $0x154] sm:$0xf0]  ;;  %v814_v37 = vld [vmem:[#allocation2 + $0x4c] sm:$0xf]  ;;  %v592_v41 = vor.u32 %v816_v33, %v591_v32 }
  0x2a   :  { %510 = vmatpush.bf16.msrb.mxu2 %v676_v45  ;;  %479 = vmatmul.bf16.vlgmr.msra.gmra.mxu3 %v929_v56  ;;  %v593_v38 = vld [vmem:[#allocation2 + $0x58] sm:$0xf0]  ;;  %v846_v39 = vld [vmem:[#allocation2 + $0x14c] sm:$0xf]  ;;  %v720_v42 = vor.u32 %v848_v36, %v719_v34  ;;  %v575_v44 = vld [vmem:[#allocation2 + $0x28] sm:$0xf] }
  0x2b   :  { %523 = vmatpush.bf16.msrb.mxu3 %v804_v49  ;;  %v721_v40 = vld [vmem:[#allocation2 + $0x158] sm:$0xf0]  ;;  %v596_v43 = vor.u32 %v814_v37, %v593_v38  ;;  %v812_v45 = vld [vmem:[#allocation2 + $0x34] sm:$0xf0]  ;;  %v703_v46 = vld [vmem:[#allocation2 + $0x128] sm:$0xf] }
  0x2c   :  { %485 = vmatpush.bf16.msrb.mxu0 %v656_v57  ;;  %v724_v47 = vor.u32 %v846_v39, %v721_v40  ;;  %v844_v48 = vld [vmem:[#allocation2 + $0x134] sm:$0xf0]  ;;  %v810_v49 = vld [vmem:[#allocation2 + $0x2c] sm:$0xf]  ;;  %v577_v50 = vld [vmem:[#allocation2 + $0x38] sm:$0xf0]  ;;  %v576_v54 = vor.u32 %v812_v45, %v575_v44 }
  0x2d   :  { %498 = vmatpush.bf16.msrb.mxu1 %v784_v58  ;;  %v842_v51 = vld [vmem:[#allocation2 + $0x12c] sm:$0xf]  ;;  %v705_v52 = vld [vmem:[#allocation2 + $0x138] sm:$0xf0]  ;;  %v704_v55 = vor.u32 %v844_v48, %v703_v46  ;;  %v580_v57 = vor.u32 %v810_v49, %v577_v50  ;;  %v559_v58 = vld [vmem:[#allocation2 + $0x8] sm:$0xf] }
  0x2e   :  { %511 = vmatpush.bf16.msrb.mxu2 %v660_v59  ;;  %v808_v59 = vld [vmem:[#allocation2 + $0x14] sm:$0xf0]  ;;  %v687_v60 = vld [vmem:[#allocation2 + $0x108] sm:$0xf]  ;;  %v708_v61 = vor.u32 %v842_v51, %v705_v52  ;;  %v561_v0 = vld [vmem:[#allocation2 + $0x18] sm:$0xf0] }
  0x2f   :  { %524 = vmatpush.bf16.msrb.mxu3 %v788_v63  ;;  %v840_v62 = vld [vmem:[#allocation2 + $0x114] sm:$0xf0]  ;;  %v806_v63 = vld [vmem:[#allocation2 + $0xc] sm:$0xf]  ;;  %v689_v2 = vld [vmem:[#allocation2 + $0x118] sm:$0xf0]  ;;  %v560_v3 = vor.u32 %v808_v59, %v559_v58 }
  0x30   :  { %486 = vmatpush.bf16.msrb.mxu0 %v640_v5  ;;  %v838_v1 = vld [vmem:[#allocation2 + $0x10c] sm:$0xf]  ;;  %v688_v4 = vor.u32 %v840_v62, %v687_v60  ;;  %v564_v5 = vor.u32 %v806_v63, %v561_v0 }
  0x31   :  { %499 = vmatpush.bf16.msrb.mxu1 %v768_v6  ;;  %v692_v6 = vor.u32 %v838_v1, %v689_v2 }
  0x32   :  { %512 = vmatpush.bf16.msrb.mxu2 %v644_v7  ;;  %v95_v7 = vld [vmem:[%s950_s2] sm:$0xf] }
  0x33   :  { %525 = vmatpush.bf16.msrb.mxu3 %v772_v11  ;;  %v97_v8 = vperm.slane %v95_v7, 0  ;;  %v98_v12 = vperm.slane %v95_v7, 1  ;;  %v100_v27 = vperm.slane %v95_v7, 3 }
  0x34   :  { %487 = vmatpush.bf16.msrb.mxu0 %v624_v17 }
  0x35   :  { %500 = vmatpush.bf16.msrb.mxu1 %v752_v18 }
  0x36   :  { %513 = vmatpush.bf16.msrb.mxu2 %v628_v19 }
  0x37   :  { %526 = vmatpush.bf16.msrb.mxu3 %v756_v23  ;;  %v99_v23 = vperm.slane %v95_v7, 2 }
  0x38   :  { %488 = vmatpush.bf16.msrb.mxu0 %v608_v29 }
  0x39   :  { %501 = vmatpush.bf16.msrb.mxu1 %v736_v30 }
  0x3a   :  { %514 = vmatpush.bf16.msrb.mxu2 %v612_v31 }
  0x3b   :  { %527 = vmatpush.bf16.msrb.mxu3 %v740_v35 }
  0x3c   :  { %489 = vmatpush.bf16.msrb.mxu0 %v592_v41 }
  0x3d   :  { %502 = vmatpush.bf16.msrb.mxu1 %v720_v42 }
  0x3e   :  { %515 = vmatpush.bf16.msrb.mxu2 %v596_v43 }
  0x3f   :  { %528 = vmatpush.bf16.msrb.mxu3 %v724_v47 }
  0x40   :  { %490 = vmatpush.bf16.msrb.mxu0 %v576_v54 }
  0x41   :  { %503 = vmatpush.bf16.msrb.mxu1 %v704_v55 }
  0x42   :  { %516 = vmatpush.bf16.msrb.mxu2 %v580_v57 }
  0x43   :  { %529 = vmatpush.bf16.msrb.mxu3 %v708_v61 }
  0x44   :  { %491 = vmatpush.bf16.msrb.mxu0 %v560_v3 }
  0x45   :  { %504 = vmatpush.bf16.msrb.mxu1 %v688_v4 }
  0x46   :  { %517 = vmatpush.bf16.msrb.mxu2 %v564_v5 }
  0x47   :  { %530 = vmatpush.bf16.msrb.mxu3 %v692_v6  ;;  %492 = vmatmul.bf16.vlgmr.msrb.gmra.mxu0 %v927_v53 }
  0x48   :  { %505 = vmatmul.bf16.vlgmr.msrb.gmra.mxu1 %v929_v56 }
  0x49   :  { %518 = vmatmul.bf16.vlgmr.msrb.gmra.mxu2 %v927_v53 }
  0x4a   :  { %531 = vmatmul.bf16.vlgmr.msrb.gmra.mxu3 %v929_v56 }
  0xa4   :  { %v441_v9 = vpop.f32.mrf.mxu0 }
  0xa5   :  { %v442_v10 = vadd.f32 %v441_v9, %v97_v8  ;;  %v454_v11 = vpop.f32.mrf.mxu1 }
  0xa7   :  { %v455_v13 = vadd.f32 %v454_v11, %v442_v10 }
  0xa9   :  { %v536_v17 = vmax.f32 %v455_v13, 0.0 }
  0xac   :  { %v467_v14 = vpop.f32.mrf.mxu2  ;;  %v443_v19 = vpop.f32.mrf.mxu0 }
  0xad   :  { %v468_v15 = vadd.f32 %v467_v14, %v98_v12  ;;  %v480_v16 = vpop.f32.mrf.mxu3  ;;  %v456_v20 = vpop.f32.mrf.mxu1 }
  0xaf   :  { %v481_v18 = vadd.f32 %v480_v16, %v468_v15 }
  0xb1   :  { %v537_v53 = vmax.f32 %v481_v18, 0.0 }
  0xb3   :  { %v540_v21 = vpack.c.bf16 %v537_v53, %v536_v17 }
  0xb4   :  { %v469_v56 = vpop.f32.mrf.mxu2 }
  0xb5   :  { %542 = vst [vmem:[%s951_s3] sm:$0xff] %v540_v21  ;;  %v482_v22 = vpop.f32.mrf.mxu3 }
  0xc4   :  { %v493_v24 = vpop.f32.mrf.mxu0 }
  0xc5   :  { %v506_v25 = vpop.f32.mrf.mxu1  ;;  %v494_v26 = vadd.f32 %v493_v24, %v99_v23 }
  0xc7   :  { %v507_v28 = vadd.f32 %v506_v25, %v494_v26 }
  0xc9   :  { %v538_v34 = vmax.f32 %v507_v28, 0.0 }
  0xcc   :  { %v519_v29 = vpop.f32.mrf.mxu2  ;;  %v495_v32 = vpop.f32.mrf.mxu0 }
  0xcd   :  { %v520_v30 = vadd.f32 %v519_v29, %v100_v27  ;;  %v532_v31 = vpop.f32.mrf.mxu3  ;;  %v508_v33 = vpop.f32.mrf.mxu1 }
  0xcf   :  { %v533_v35 = vadd.f32 %v532_v31, %v520_v30 }
  0xd1   :  { %v539_v36 = vmax.f32 %v533_v35, 0.0 }
  0xd3   :  { %v541_v37 = vpack.c.bf16 %v539_v36, %v538_v34 }
  0xd4   :  { %v521_v38 = vpop.f32.mrf.mxu2 }
  0xd5   :  { %543 = vst [vmem:[%s951_s3 + $0x8] sm:$0xff] %v541_v37  ;;  %v534_v39 = vpop.f32.mrf.mxu3 }
  0xd6   :  { %548 = vsyncpa [#allocation3], 1 }

// kernel: net_without_ldl_and_cnn_forward.4
= control target key start
LH: loop header
LB: loop body
LE: loop exit
PB: predicated region body
PF: predicated region fallthrough
CT: control target
= control target key end

     0   :  { %8 = vsyncpa [#allocation3], 0  ;;  %s1307_s15 = smov [#allocation2]   ;;  %s1308_s17 = smov 256   ;;  %s1366_s0 = inlined_call_operand.vmem [shape: bf16[8,384], index: 0, kind: input, shape index: {}]   ;;  %s1367_s1 = inlined_call_operand.hbm [shape: bf16[384,512], index: 1, kind: input, shape index: {}]   ;;  %s1368_s2 = inlined_call_operand.vmem [shape: f32[1,512], index: 2, kind: input, shape index: {}]   ;;  %s1369_s3 = inlined_call_operand.vmem [shape: bf16[8,512], index: 3, kind: output, shape index: {}]  }
   0x1   :  { %s15_s14 = sshll.u32 %s1367_s1, 4  ;;  %s17_s16 = sshll.u32 %s1307_s15, 4  ;;  %s16_s14 = int_to_ptr.hbm [resolvable:$true] %s15_s14  ;;  %s18_s16 = int_to_ptr.vmem [resolvable:$true] %s17_s16 }
   0x2   :  { %s1309_s18 = smov 16  }
   0x3   :  { %23 = dma.hbm_to_vmem [thread:$0]  %s16_s14, 12288, %s18_s16, [#allocation3], %s1308_s17, %s1308_s17, %s1309_s18  }
   0x4   :  { %1305 = dma.done.wait [#allocation3], 12288  }
   0x5   :  { %1306 = vsyncadd [#allocation3], 4294955008  ;;  %v912_v0 = vld [vmem:[#allocation2 + $0xe0] sm:$0xf]  ;;  %v1212_v1 = vld [vmem:[#allocation2 + $0xec] sm:$0xf0] }
   0x6   :  { %v1040_v2 = vld [vmem:[#allocation2 + $0x1e0] sm:$0xf]  ;;  %v913_v3 = vor.u32 %v1212_v1, %v912_v0  ;;  %v1244_v4 = vld [vmem:[#allocation2 + $0x1ec] sm:$0xf0]  ;;  %v1210_v9 = vld [vmem:[#allocation2 + $0xe4] sm:$0xf] }
   0x7   :  { %v1168_v5 = vld [vmem:[#allocation2 + $0x2e0] sm:$0xf]  ;;  %v1276_v6 = vld [vmem:[#allocation2 + $0x2ec] sm:$0xf0]  ;;  %v1041_v7 = vor.u32 %v1244_v4, %v1040_v2  ;;  %v914_v10 = vld [vmem:[#allocation2 + $0xf0] sm:$0xf0] }
   0x8   :  { %v1169_v8 = vor.u32 %v1276_v6, %v1168_v5  ;;  %v896_v11 = vld [vmem:[#allocation2 + $0xc0] sm:$0xf]  ;;  %629 = vmatpush.bf16.msra.mxu0 %v913_v3  ;;  %v917_v12 = vor.u32 %v1210_v9, %v914_v10  ;;  %v1208_v13 = vld [vmem:[#allocation2 + $0xcc] sm:$0xf0]  ;;  %v1206_v20 = vld [vmem:[#allocation2 + $0xc4] sm:$0xf] }
   0x9   :  { %v1024_v14 = vld [vmem:[#allocation2 + $0x1c0] sm:$0xf]  ;;  %v1240_v15 = vld [vmem:[#allocation2 + $0x1cc] sm:$0xf0]  ;;  %642 = vmatpush.bf16.msra.mxu1 %v1041_v7  ;;  %v897_v16 = vor.u32 %v1208_v13, %v896_v11  ;;  %v898_v22 = vld [vmem:[#allocation2 + $0xd0] sm:$0xf0] }
   0xa   :  { %655 = vmatpush.bf16.msra.mxu2 %v1169_v8  ;;  %v1025_v17 = vor.u32 %v1240_v15, %v1024_v14  ;;  %v1152_v18 = vld [vmem:[#allocation2 + $0x2c0] sm:$0xf]  ;;  %v1272_v19 = vld [vmem:[#allocation2 + $0x2cc] sm:$0xf0]  ;;  %668 = vmatpush.bf16.msra.mxu3 %v917_v12  ;;  %v901_v25 = vor.u32 %v1206_v20, %v898_v22  ;;  %v1202_v31 = vld [vmem:[#allocation2 + $0xa4] sm:$0xf] }
   0xb   :  { %v1153_v21 = vor.u32 %v1272_v19, %v1152_v18  ;;  %v880_v23 = vld [vmem:[#allocation2 + $0xa0] sm:$0xf]  ;;  %v1204_v24 = vld [vmem:[#allocation2 + $0xac] sm:$0xf0]  ;;  %v882_v32 = vld [vmem:[#allocation2 + $0xb0] sm:$0xf0] }
   0xc   :  { %v1008_v26 = vld [vmem:[#allocation2 + $0x1a0] sm:$0xf]  ;;  %v1236_v27 = vld [vmem:[#allocation2 + $0x1ac] sm:$0xf0]  ;;  %630 = vmatpush.bf16.msra.mxu0 %v897_v16  ;;  %v881_v29 = vor.u32 %v1204_v24, %v880_v23  ;;  %v885_v38 = vor.u32 %v1202_v31, %v882_v32  ;;  %v1198_v42 = vld [vmem:[#allocation2 + $0x84] sm:$0xf] }
   0xd   :  { %v1136_v28 = vld [vmem:[#allocation2 + $0x2a0] sm:$0xf]  ;;  %v1268_v30 = vld [vmem:[#allocation2 + $0x2ac] sm:$0xf0]  ;;  %643 = vmatpush.bf16.msra.mxu1 %v1025_v17  ;;  %v1009_v33 = vor.u32 %v1236_v27, %v1008_v26  ;;  %v866_v43 = vld [vmem:[#allocation2 + $0x90] sm:$0xf0] }
   0xe   :  { %656 = vmatpush.bf16.msra.mxu2 %v1153_v21  ;;  %v1137_v34 = vor.u32 %v1268_v30, %v1136_v28  ;;  %v864_v35 = vld [vmem:[#allocation2 + $0x80] sm:$0xf]  ;;  %v1200_v36 = vld [vmem:[#allocation2 + $0x8c] sm:$0xf0]  ;;  %669 = vmatpush.bf16.msra.mxu3 %v901_v25  ;;  %v869_v50 = vor.u32 %v1198_v42, %v866_v43  ;;  %v1194_v54 = vld [vmem:[#allocation2 + $0x64] sm:$0xf] }
   0xf   :  { %v992_v37 = vld [vmem:[#allocation2 + $0x180] sm:$0xf]  ;;  %v1232_v39 = vld [vmem:[#allocation2 + $0x18c] sm:$0xf0]  ;;  %v865_v44 = vor.u32 %v1200_v36, %v864_v35  ;;  %v850_v55 = vld [vmem:[#allocation2 + $0x70] sm:$0xf0] }
  0x10   :  { %v1120_v40 = vld [vmem:[#allocation2 + $0x280] sm:$0xf]  ;;  %v1264_v41 = vld [vmem:[#allocation2 + $0x28c] sm:$0xf0]  ;;  %631 = vmatpush.bf16.msra.mxu0 %v881_v29  ;;  %v993_v45 = vor.u32 %v1232_v39, %v992_v37  ;;  %v853_v62 = vor.u32 %v1194_v54, %v850_v55  ;;  %v1190_v2 = vld [vmem:[#allocation2 + $0x44] sm:$0xf] }
  0x11   :  { %644 = vmatpush.bf16.msra.mxu1 %v1009_v33  ;;  %v1121_v46 = vor.u32 %v1264_v41, %v1120_v40  ;;  %v848_v47 = vld [vmem:[#allocation2 + $0x60] sm:$0xf]  ;;  %v1196_v48 = vld [vmem:[#allocation2 + $0x6c] sm:$0xf0]  ;;  %v834_v3 = vld [vmem:[#allocation2 + $0x50] sm:$0xf0] }
  0x12   :  { %657 = vmatpush.bf16.msra.mxu2 %v1137_v34  ;;  %v976_v49 = vld [vmem:[#allocation2 + $0x160] sm:$0xf]  ;;  %670 = vmatpush.bf16.msra.mxu3 %v885_v38  ;;  %v1228_v51 = vld [vmem:[#allocation2 + $0x16c] sm:$0xf0]  ;;  %v849_v56 = vor.u32 %v1196_v48, %v848_v47  ;;  %v837_v10 = vor.u32 %v1190_v2, %v834_v3  ;;  %v1186_v14 = vld [vmem:[#allocation2 + $0x24] sm:$0xf] }
  0x13   :  { %v1104_v52 = vld [vmem:[#allocation2 + $0x260] sm:$0xf]  ;;  %v1260_v53 = vld [vmem:[#allocation2 + $0x26c] sm:$0xf0]  ;;  %v977_v57 = vor.u32 %v1228_v51, %v976_v49  ;;  %v818_v15 = vld [vmem:[#allocation2 + $0x30] sm:$0xf0] }
  0x14   :  { %632 = vmatpush.bf16.msra.mxu0 %v865_v44  ;;  %v1105_v58 = vor.u32 %v1260_v53, %v1104_v52  ;;  %v832_v59 = vld [vmem:[#allocation2 + $0x40] sm:$0xf]  ;;  %v1192_v60 = vld [vmem:[#allocation2 + $0x4c] sm:$0xf0]  ;;  %v821_v24 = vor.u32 %v1186_v14, %v818_v15  ;;  %v1182_v26 = vld [vmem:[#allocation2 + $0x4] sm:$0xf] }
  0x15   :  { %645 = vmatpush.bf16.msra.mxu1 %v993_v45  ;;  %v960_v61 = vld [vmem:[#allocation2 + $0x140] sm:$0xf]  ;;  %v1224_v63 = vld [vmem:[#allocation2 + $0x14c] sm:$0xf0]  ;;  %v833_v4 = vor.u32 %v1192_v60, %v832_v59  ;;  %v802_v27 = vld [vmem:[#allocation2 + $0x10] sm:$0xf0] }
  0x16   :  { %658 = vmatpush.bf16.msra.mxu2 %v1121_v46  ;;  %671 = vmatpush.bf16.msra.mxu3 %v869_v50  ;;  %v1088_v0 = vld [vmem:[#allocation2 + $0x240] sm:$0xf]  ;;  %v1256_v1 = vld [vmem:[#allocation2 + $0x24c] sm:$0xf0]  ;;  %v961_v5 = vor.u32 %v1224_v63, %v960_v61  ;;  %v1242_v28 = vld [vmem:[#allocation2 + $0x1e4] sm:$0xf]  ;;  %v805_v39 = vor.u32 %v1182_v26, %v802_v27 }
  0x17   :  { %v1089_v6 = vor.u32 %v1256_v1, %v1088_v0  ;;  %v816_v7 = vld [vmem:[#allocation2 + $0x20] sm:$0xf]  ;;  %v1188_v8 = vld [vmem:[#allocation2 + $0x2c] sm:$0xf0]  ;;  %v1042_v29 = vld [vmem:[#allocation2 + $0x1f0] sm:$0xf0] }
  0x18   :  { %633 = vmatpush.bf16.msra.mxu0 %v849_v56  ;;  %v944_v9 = vld [vmem:[#allocation2 + $0x120] sm:$0xf]  ;;  %v1220_v11 = vld [vmem:[#allocation2 + $0x12c] sm:$0xf0]  ;;  %v817_v16 = vor.u32 %v1188_v8, %v816_v7  ;;  %v1274_v30 = vld [vmem:[#allocation2 + $0x2e4] sm:$0xf]  ;;  %v1045_v40 = vor.u32 %v1242_v28, %v1042_v29 }
  0x19   :  { %646 = vmatpush.bf16.msra.mxu1 %v977_v57  ;;  %v1072_v12 = vld [vmem:[#allocation2 + $0x220] sm:$0xf]  ;;  %v1252_v13 = vld [vmem:[#allocation2 + $0x22c] sm:$0xf0]  ;;  %v945_v19 = vor.u32 %v1220_v11, %v944_v9  ;;  %v1170_v32 = vld [vmem:[#allocation2 + $0x2f0] sm:$0xf0] }
  0x1a   :  { %659 = vmatpush.bf16.msra.mxu2 %v1105_v58  ;;  %672 = vmatpush.bf16.msra.mxu3 %v853_v62  ;;  %v800_v17 = vld [vmem:[#allocation2] sm:$0xf]  ;;  %v1184_v18 = vld [vmem:[#allocation2 + $0xc] sm:$0xf0]  ;;  %v1073_v20 = vor.u32 %v1252_v13, %v1072_v12  ;;  %v920_v33 = vld [vmem:[#allocation2 + $0xe8] sm:$0xf]  ;;  %v1173_v41 = vor.u32 %v1274_v30, %v1170_v32 }
  0x1b   :  { %v928_v21 = vld [vmem:[#allocation2 + $0x100] sm:$0xf]  ;;  %v1216_v22 = vld [vmem:[#allocation2 + $0x10c] sm:$0xf0]  ;;  %v801_v31 = vor.u32 %v1184_v18, %v800_v17  ;;  %v1213_v34 = vld [vmem:[#allocation2 + $0xf4] sm:$0xf0] }
  0x1c   :  { %634 = vmatpush.bf16.msra.mxu0 %v833_v4  ;;  %v1056_v23 = vld [vmem:[#allocation2 + $0x200] sm:$0xf]  ;;  %v1248_v25 = vld [vmem:[#allocation2 + $0x20c] sm:$0xf0]  ;;  %v929_v35 = vor.u32 %v1216_v22, %v928_v21  ;;  %v1048_v37 = vld [vmem:[#allocation2 + $0x1e8] sm:$0xf]  ;;  %v921_v42 = vor.u32 %v1213_v34, %v920_v33 }
  0x1d   :  { %647 = vmatpush.bf16.msra.mxu1 %v961_v5  ;;  %v1057_v36 = vor.u32 %v1248_v25, %v1056_v23  ;;  %v1245_v38 = vld [vmem:[#allocation2 + $0x1f4] sm:$0xf0]  ;;  %v1238_v43 = vld [vmem:[#allocation2 + $0x1c4] sm:$0xf]  ;;  %v1026_v44 = vld [vmem:[#allocation2 + $0x1d0] sm:$0xf0] }
  0x1e   :  { %660 = vmatpush.bf16.msra.mxu2 %v1089_v6  ;;  %673 = vmatpush.bf16.msra.mxu3 %v837_v10  ;;  %v1270_v45 = vld [vmem:[#allocation2 + $0x2c4] sm:$0xf]  ;;  %v1049_v46 = vor.u32 %v1245_v38, %v1048_v37  ;;  %v1154_v47 = vld [vmem:[#allocation2 + $0x2d0] sm:$0xf0]  ;;  %v904_v48 = vld [vmem:[#allocation2 + $0xc8] sm:$0xf]  ;;  %v1029_v53 = vor.u32 %v1238_v43, %v1026_v44 }
  0x1f   :  { %v1209_v49 = vld [vmem:[#allocation2 + $0xd4] sm:$0xf0]  ;;  %v1032_v50 = vld [vmem:[#allocation2 + $0x1c8] sm:$0xf]  ;;  %v30_v52 = vld [vmem:[%s1366_s0] sm:$0xff]  ;;  %v1157_v57 = vor.u32 %v1270_v45, %v1154_v47 }
  0x20   :  { %635 = vmatpush.bf16.msra.mxu0 %v817_v16  ;;  %v1241_v51 = vld [vmem:[#allocation2 + $0x1d4] sm:$0xf0]  ;;  %v1234_v54 = vld [vmem:[#allocation2 + $0x1a4] sm:$0xf]  ;;  %v140_v55 = vunpack.c.l.b16 %v30_v52  ;;  %v141_v56 = vunpack.c.h.b16 %v30_v52  ;;  %v905_v58 = vor.u32 %v1209_v49, %v904_v48  ;;  %v1010_v59 = vld [vmem:[#allocation2 + $0x1b0] sm:$0xf0] }
  0x21   :  { %648 = vmatpush.bf16.msra.mxu1 %v945_v19  ;;  %v1266_v60 = vld [vmem:[#allocation2 + $0x2a4] sm:$0xf]  ;;  %v1138_v61 = vld [vmem:[#allocation2 + $0x2b0] sm:$0xf0]  ;;  %v1033_v62 = vor.u32 %v1241_v51, %v1032_v50  ;;  %v888_v63 = vld [vmem:[#allocation2 + $0xa8] sm:$0xf]  ;;  %v1013_v7 = vor.u32 %v1234_v54, %v1010_v59 }
  0x22   :  { %661 = vmatpush.bf16.msra.mxu2 %v1073_v20  ;;  %674 = vmatpush.bf16.msra.mxu3 %v821_v24  ;;  %v1205_v0 = vld [vmem:[#allocation2 + $0xb4] sm:$0xf0]  ;;  %v1336_v1 = vpack.c.b16 %v140_v55, %v140_v55  ;;  %v1338_v2 = vpack.c.b16 %v141_v56, %v141_v56  ;;  %v31_v3 = vld [vmem:[%s1366_s0 + $0x8] sm:$0xf]  ;;  %v1141_v8 = vor.u32 %v1266_v60, %v1138_v61  ;;  %v1230_v10 = vld [vmem:[#allocation2 + $0x184] sm:$0xf] }
  0x23   :  { %v1016_v4 = vld [vmem:[#allocation2 + $0x1a8] sm:$0xf]  ;;  %v1237_v5 = vld [vmem:[#allocation2 + $0x1b4] sm:$0xf0]  ;;  %v142_v6 = vunpack.c.l.b16 %v31_v3  ;;  %v889_v9 = vor.u32 %v1205_v0, %v888_v63  ;;  %v994_v11 = vld [vmem:[#allocation2 + $0x190] sm:$0xf0] }
  0x24   :  { %636 = vmatpush.bf16.msra.mxu0 %v801_v31  ;;  %v1262_v12 = vld [vmem:[#allocation2 + $0x284] sm:$0xf]  ;;  %v1017_v14 = vor.u32 %v1237_v5, %v1016_v4  ;;  %v1122_v15 = vld [vmem:[#allocation2 + $0x290] sm:$0xf0]  ;;  %v872_v16 = vld [vmem:[#allocation2 + $0x88] sm:$0xf]  ;;  %v997_v20 = vor.u32 %v1230_v10, %v994_v11 }
  0x25   :  { %649 = vmatpush.bf16.msra.mxu1 %v929_v35  ;;  %v1344_v13 = vpack.c.b16 %v142_v6, %v142_v6  ;;  %v1201_v17 = vld [vmem:[#allocation2 + $0x94] sm:$0xf0]  ;;  %v1000_v18 = vld [vmem:[#allocation2 + $0x188] sm:$0xf]  ;;  %v1125_v21 = vor.u32 %v1262_v12, %v1122_v15  ;;  %v1226_v23 = vld [vmem:[#allocation2 + $0x164] sm:$0xf] }
  0x26   :  { %662 = vmatpush.bf16.msra.mxu2 %v1057_v36  ;;  %675 = vmatpush.bf16.msra.mxu3 %v805_v39  ;;  %v1233_v19 = vld [vmem:[#allocation2 + $0x194] sm:$0xf0]  ;;  %v873_v22 = vor.u32 %v1201_v17, %v872_v16  ;;  %v978_v24 = vld [vmem:[#allocation2 + $0x170] sm:$0xf0]  ;;  %v1258_v25 = vld [vmem:[#allocation2 + $0x264] sm:$0xf] }
  0x27   :  { %637 = vmatmul.bf16.vlgmr.msra.gmra.mxu0 %v1336_v1  ;;  %v1001_v26 = vor.u32 %v1233_v19, %v1000_v18  ;;  %v1106_v27 = vld [vmem:[#allocation2 + $0x270] sm:$0xf0]  ;;  %v856_v28 = vld [vmem:[#allocation2 + $0x68] sm:$0xf]  ;;  %v1197_v29 = vld [vmem:[#allocation2 + $0x74] sm:$0xf0]  ;;  %v981_v32 = vor.u32 %v1226_v23, %v978_v24 }
  0x28   :  { %681 = vmatpush.bf16.msrb.mxu0 %v1045_v40  ;;  %650 = vmatmul.bf16.vlgmr.msra.gmra.mxu1 %v1338_v2  ;;  %v984_v30 = vld [vmem:[#allocation2 + $0x168] sm:$0xf]  ;;  %v1229_v31 = vld [vmem:[#allocation2 + $0x174] sm:$0xf0]  ;;  %v1109_v33 = vor.u32 %v1258_v25, %v1106_v27  ;;  %v857_v34 = vor.u32 %v1197_v29, %v856_v28  ;;  %v1222_v35 = vld [vmem:[#allocation2 + $0x144] sm:$0xf] }
  0x29   :  { %694 = vmatpush.bf16.msrb.mxu1 %v1173_v41  ;;  %663 = vmatmul.bf16.vlgmr.msra.gmra.mxu2 %v1344_v13  ;;  %v962_v36 = vld [vmem:[#allocation2 + $0x150] sm:$0xf0]  ;;  %v1254_v37 = vld [vmem:[#allocation2 + $0x244] sm:$0xf]  ;;  %v985_v38 = vor.u32 %v1229_v31, %v984_v30  ;;  %v840_v40 = vld [vmem:[#allocation2 + $0x48] sm:$0xf] }
  0x2a   :  { %707 = vmatpush.bf16.msrb.mxu2 %v921_v42  ;;  %720 = vmatpush.bf16.msrb.mxu3 %v1049_v46  ;;  %v1090_v39 = vld [vmem:[#allocation2 + $0x250] sm:$0xf0]  ;;  %v1193_v41 = vld [vmem:[#allocation2 + $0x54] sm:$0xf0]  ;;  %v968_v42 = vld [vmem:[#allocation2 + $0x148] sm:$0xf]  ;;  %v965_v44 = vor.u32 %v1222_v35, %v962_v36 }
  0x2b   :  { %676 = vmatmul.bf16.vlgmr.msra.gmra.mxu3 %v1336_v1  ;;  %v1225_v43 = vld [vmem:[#allocation2 + $0x154] sm:$0xf0]  ;;  %v1093_v45 = vor.u32 %v1254_v37, %v1090_v39  ;;  %v841_v46 = vor.u32 %v1193_v41, %v840_v40  ;;  %v1218_v47 = vld [vmem:[#allocation2 + $0x124] sm:$0xf]  ;;  %v946_v48 = vld [vmem:[#allocation2 + $0x130] sm:$0xf0] }
  0x2c   :  { %682 = vmatpush.bf16.msrb.mxu0 %v1029_v53  ;;  %v1250_v49 = vld [vmem:[#allocation2 + $0x224] sm:$0xf]  ;;  %v969_v50 = vor.u32 %v1225_v43, %v968_v42  ;;  %v1074_v51 = vld [vmem:[#allocation2 + $0x230] sm:$0xf0]  ;;  %v824_v52 = vld [vmem:[#allocation2 + $0x28] sm:$0xf]  ;;  %v949_v56 = vor.u32 %v1218_v47, %v946_v48 }
  0x2d   :  { %695 = vmatpush.bf16.msrb.mxu1 %v1157_v57  ;;  %v1189_v53 = vld [vmem:[#allocation2 + $0x34] sm:$0xf0]  ;;  %v952_v54 = vld [vmem:[#allocation2 + $0x128] sm:$0xf]  ;;  %v1214_v57 = vld [vmem:[#allocation2 + $0x104] sm:$0xf]  ;;  %v1077_v59 = vor.u32 %v1250_v49, %v1074_v51 }
  0x2e   :  { %708 = vmatpush.bf16.msrb.mxu2 %v905_v58  ;;  %721 = vmatpush.bf16.msrb.mxu3 %v1033_v62  ;;  %v1221_v55 = vld [vmem:[#allocation2 + $0x134] sm:$0xf0]  ;;  %v930_v58 = vld [vmem:[#allocation2 + $0x110] sm:$0xf0]  ;;  %v825_v60 = vor.u32 %v1189_v53, %v824_v52  ;;  %v1246_v61 = vld [vmem:[#allocation2 + $0x204] sm:$0xf] }
  0x2f   :  { %v1058_v62 = vld [vmem:[#allocation2 + $0x210] sm:$0xf0]  ;;  %v808_v63 = vld [vmem:[#allocation2 + $0x8] sm:$0xf]  ;;  %v953_v0 = vor.u32 %v1221_v55, %v952_v54  ;;  %v1185_v3 = vld [vmem:[#allocation2 + $0x14] sm:$0xf0] }
  0x30   :  { %683 = vmatpush.bf16.msrb.mxu0 %v1013_v7  ;;  %v936_v4 = vld [vmem:[#allocation2 + $0x108] sm:$0xf]  ;;  %v1217_v5 = vld [vmem:[#allocation2 + $0x114] sm:$0xf0]  ;;  %v922_v10 = vld [vmem:[#allocation2 + $0xf8] sm:$0xf0]  ;;  %v809_v15 = vor.u32 %v1185_v3, %v808_v63 }
  0x31   :  { %696 = vmatpush.bf16.msrb.mxu1 %v1141_v8  ;;  %v1176_v6 = vld [vmem:[#allocation2 + $0x2e8] sm:$0xf]  ;;  %v1277_v7 = vld [vmem:[#allocation2 + $0x2f4] sm:$0xf0]  ;;  %v1211_v8 = vld [vmem:[#allocation2 + $0xec] sm:$0xf]  ;;  %v937_v18 = vor.u32 %v1217_v5, %v936_v4 }
  0x32   :  { %709 = vmatpush.bf16.msrb.mxu2 %v889_v9  ;;  %722 = vmatpush.bf16.msrb.mxu3 %v1017_v14  ;;  %v933_v9 = vor.u32 %v1214_v57, %v930_v58  ;;  %v1243_v11 = vld [vmem:[#allocation2 + $0x1ec] sm:$0xf]  ;;  %v1050_v12 = vld [vmem:[#allocation2 + $0x1f8] sm:$0xf0]  ;;  %v1061_v14 = vor.u32 %v1246_v61, %v1058_v62  ;;  %v1177_v19 = vor.u32 %v1277_v7, %v1176_v6  ;;  %v1273_v23 = vld [vmem:[#allocation2 + $0x2d4] sm:$0xf0] }
  0x33   :  { %v1275_v16 = vld [vmem:[#allocation2 + $0x2ec] sm:$0xf]  ;;  %v1178_v17 = vld [vmem:[#allocation2 + $0x2f8] sm:$0xf0]  ;;  %v1269_v35 = vld [vmem:[#allocation2 + $0x2b4] sm:$0xf0] }
  0x34   :  { %684 = vmatpush.bf16.msrb.mxu0 %v997_v20  ;;  %v925_v20 = vor.u32 %v1211_v8, %v922_v10  ;;  %v1207_v24 = vld [vmem:[#allocation2 + $0xcc] sm:$0xf]  ;;  %v1181_v25 = vor.u32 %v1275_v16, %v1178_v17  ;;  %v1034_v28 = vld [vmem:[#allocation2 + $0x1d8] sm:$0xf0]  ;;  %v1265_v47 = vld [vmem:[#allocation2 + $0x294] sm:$0xf0] }
  0x35   :  { %697 = vmatpush.bf16.msrb.mxu1 %v1125_v21  ;;  %v1053_v21 = vor.u32 %v1243_v11, %v1050_v12  ;;  %v1239_v27 = vld [vmem:[#allocation2 + $0x1cc] sm:$0xf]  ;;  %v1162_v30 = vld [vmem:[#allocation2 + $0x2d8] sm:$0xf0]  ;;  %v1112_v58 = vld [vmem:[#allocation2 + $0x268] sm:$0xf] }
  0x36   :  { %710 = vmatpush.bf16.msrb.mxu2 %v873_v22  ;;  %723 = vmatpush.bf16.msrb.mxu3 %v1001_v26  ;;  %v1160_v22 = vld [vmem:[#allocation2 + $0x2c8] sm:$0xf]  ;;  %v906_v26 = vld [vmem:[#allocation2 + $0xd8] sm:$0xf0]  ;;  %v1271_v29 = vld [vmem:[#allocation2 + $0x2cc] sm:$0xf] }
  0x37   :  { %v1161_v31 = vor.u32 %v1273_v23, %v1160_v22  ;;  %v1203_v36 = vld [vmem:[#allocation2 + $0xac] sm:$0xf]  ;;  %v1165_v37 = vor.u32 %v1271_v29, %v1162_v30  ;;  %v1018_v40 = vld [vmem:[#allocation2 + $0x1b8] sm:$0xf0]  ;;  %v1096_v8 = vld [vmem:[#allocation2 + $0x248] sm:$0xf] }
  0x38   :  { %685 = vmatpush.bf16.msrb.mxu0 %v981_v32  ;;  %v909_v32 = vor.u32 %v1207_v24, %v906_v26  ;;  %v1235_v39 = vld [vmem:[#allocation2 + $0x1ac] sm:$0xf]  ;;  %v1146_v42 = vld [vmem:[#allocation2 + $0x2b8] sm:$0xf0]  ;;  %v1253_v22 = vld [vmem:[#allocation2 + $0x234] sm:$0xf0] }
  0x39   :  { %698 = vmatpush.bf16.msrb.mxu1 %v1109_v33  ;;  %v1037_v33 = vor.u32 %v1239_v27, %v1034_v28  ;;  %v1267_v41 = vld [vmem:[#allocation2 + $0x2ac] sm:$0xf]  ;;  %v1002_v52 = vld [vmem:[#allocation2 + $0x198] sm:$0xf0] }
  0x3a   :  { %711 = vmatpush.bf16.msrb.mxu2 %v857_v34  ;;  %724 = vmatpush.bf16.msrb.mxu3 %v985_v38  ;;  %v1144_v34 = vld [vmem:[#allocation2 + $0x2a8] sm:$0xf]  ;;  %v890_v38 = vld [vmem:[#allocation2 + $0xb8] sm:$0xf0]  ;;  %v1199_v48 = vld [vmem:[#allocation2 + $0x8c] sm:$0xf]  ;;  %v1149_v49 = vor.u32 %v1267_v41, %v1146_v42 }
  0x3b   :  { %v1145_v43 = vor.u32 %v1269_v35, %v1144_v34  ;;  %v1231_v51 = vld [vmem:[#allocation2 + $0x18c] sm:$0xf]  ;;  %v1130_v54 = vld [vmem:[#allocation2 + $0x298] sm:$0xf0]  ;;  %v1249_v34 = vld [vmem:[#allocation2 + $0x214] sm:$0xf0] }
  0x3c   :  { %686 = vmatpush.bf16.msrb.mxu0 %v965_v44  ;;  %v893_v44 = vor.u32 %v1203_v36, %v890_v38  ;;  %v1263_v53 = vld [vmem:[#allocation2 + $0x28c] sm:$0xf]  ;;  %v1005_v57 = vor.u32 %v1231_v51, %v1002_v52  ;;  %v858_v62 = vld [vmem:[#allocation2 + $0x78] sm:$0xf0]  ;;  %v128_v52 = vld [vmem:[%s1368_s2] sm:$0xf] }
  0x3d   :  { %699 = vmatpush.bf16.msrb.mxu1 %v1093_v45  ;;  %v1021_v45 = vor.u32 %v1235_v39, %v1018_v40  ;;  %v1133_v61 = vor.u32 %v1263_v53, %v1130_v54  ;;  %v1227_v63 = vld [vmem:[#allocation2 + $0x16c] sm:$0xf]  ;;  %v1114_v4 = vld [vmem:[#allocation2 + $0x278] sm:$0xf0]  ;;  %v130_v53 = vperm.slane %v128_v52, 0 }
  0x3e   :  { %712 = vmatpush.bf16.msrb.mxu2 %v841_v46  ;;  %725 = vmatpush.bf16.msrb.mxu3 %v969_v50  ;;  %v1128_v46 = vld [vmem:[#allocation2 + $0x288] sm:$0xf]  ;;  %v874_v50 = vld [vmem:[#allocation2 + $0x98] sm:$0xf0]  ;;  %v1259_v3 = vld [vmem:[#allocation2 + $0x26c] sm:$0xf] }
  0x3f   :  { %v1129_v55 = vor.u32 %v1265_v47, %v1128_v46  ;;  %v1191_v10 = vld [vmem:[#allocation2 + $0x4c] sm:$0xf]  ;;  %v1117_v11 = vor.u32 %v1259_v3, %v1114_v4  ;;  %v842_v12 = vld [vmem:[#allocation2 + $0x58] sm:$0xf0] }
  0x40   :  { %687 = vmatpush.bf16.msrb.mxu0 %v949_v56  ;;  %v877_v56 = vor.u32 %v1199_v48, %v874_v50  ;;  %v1255_v16 = vld [vmem:[#allocation2 + $0x24c] sm:$0xf]  ;;  %v1098_v17 = vld [vmem:[#allocation2 + $0x258] sm:$0xf0] }
  0x41   :  { %700 = vmatpush.bf16.msrb.mxu1 %v1077_v59  ;;  %v1261_v59 = vld [vmem:[#allocation2 + $0x274] sm:$0xf0]  ;;  %v1187_v23 = vld [vmem:[#allocation2 + $0x2c] sm:$0xf]  ;;  %v1101_v24 = vor.u32 %v1255_v16, %v1098_v17  ;;  %v954_v27 = vld [vmem:[#allocation2 + $0x138] sm:$0xf0] }
  0x42   :  { %713 = vmatpush.bf16.msrb.mxu2 %v825_v60  ;;  %726 = vmatpush.bf16.msrb.mxu3 %v953_v0  ;;  %v1195_v60 = vld [vmem:[#allocation2 + $0x6c] sm:$0xf]  ;;  %v986_v0 = vld [vmem:[#allocation2 + $0x178] sm:$0xf0]  ;;  %v1113_v5 = vor.u32 %v1261_v59, %v1112_v58 }
  0x43   :  { %v861_v6 = vor.u32 %v1195_v60, %v858_v62  ;;  %v989_v7 = vor.u32 %v1227_v63, %v986_v0  ;;  %v1219_v26 = vld [vmem:[#allocation2 + $0x12c] sm:$0xf]  ;;  %v1082_v29 = vld [vmem:[#allocation2 + $0x238] sm:$0xf0] }
  0x44   :  { %688 = vmatpush.bf16.msrb.mxu0 %v933_v9  ;;  %v1257_v9 = vld [vmem:[#allocation2 + $0x254] sm:$0xf0]  ;;  %v1251_v28 = vld [vmem:[#allocation2 + $0x22c] sm:$0xf]  ;;  %v938_v39 = vld [vmem:[#allocation2 + $0x118] sm:$0xf0] }
  0x45   :  { %701 = vmatpush.bf16.msrb.mxu1 %v1061_v14  ;;  %v1223_v14 = vld [vmem:[#allocation2 + $0x14c] sm:$0xf]  ;;  %v1085_v36 = vor.u32 %v1251_v28, %v1082_v29  ;;  %v1066_v41 = vld [vmem:[#allocation2 + $0x218] sm:$0xf0] }
  0x46   :  { %714 = vmatpush.bf16.msrb.mxu2 %v809_v15  ;;  %727 = vmatpush.bf16.msrb.mxu3 %v937_v18  ;;  %v970_v15 = vld [vmem:[#allocation2 + $0x158] sm:$0xf0]  ;;  %v1097_v18 = vor.u32 %v1257_v9, %v1096_v8  ;;  %v1183_v35 = vld [vmem:[#allocation2 + $0xc] sm:$0xf]  ;;  %v132_v9 = vperm.slane %v128_v52, 2 }
  0x47   :  { %689 = vmatmul.bf16.vlgmr.msrb.gmra.mxu0 %v1338_v2  ;;  %v1215_v38 = vld [vmem:[#allocation2 + $0x10c] sm:$0xf] }
  0x48   :  { %733 = vmatpush.bf16.msra.mxu0 %v1177_v19  ;;  %702 = vmatmul.bf16.vlgmr.msrb.gmra.mxu1 %v1344_v13  ;;  %v845_v19 = vor.u32 %v1191_v10, %v842_v12  ;;  %v1247_v40 = vld [vmem:[#allocation2 + $0x20c] sm:$0xf] }
  0x49   :  { %746 = vmatpush.bf16.msra.mxu1 %v925_v20  ;;  %715 = vmatmul.bf16.vlgmr.msrb.gmra.mxu2 %v1336_v1  ;;  %v973_v20 = vor.u32 %v1223_v14, %v970_v15 }
  0x4a   :  { %759 = vmatpush.bf16.msra.mxu2 %v1053_v21  ;;  %772 = vmatpush.bf16.msra.mxu3 %v1181_v25  ;;  %v1080_v21 = vld [vmem:[#allocation2 + $0x228] sm:$0xf]  ;;  %v826_v25 = vld [vmem:[#allocation2 + $0x38] sm:$0xf0] }
  0x4b   :  { %728 = vmatmul.bf16.vlgmr.msrb.gmra.mxu3 %v1338_v2  ;;  %v1081_v30 = vor.u32 %v1253_v22, %v1080_v21 }
  0x4c   :  { %734 = vmatpush.bf16.msra.mxu0 %v1161_v31  ;;  %v829_v31 = vor.u32 %v1187_v23, %v826_v25 }
  0x4d   :  { %747 = vmatpush.bf16.msra.mxu1 %v909_v32  ;;  %v957_v32 = vor.u32 %v1219_v26, %v954_v27 }
  0x4e   :  { %760 = vmatpush.bf16.msra.mxu2 %v1037_v33  ;;  %773 = vmatpush.bf16.msra.mxu3 %v1165_v37  ;;  %v1064_v33 = vld [vmem:[#allocation2 + $0x208] sm:$0xf]  ;;  %v810_v37 = vld [vmem:[#allocation2 + $0x18] sm:$0xf0] }
  0x4f   :  { %v1065_v42 = vor.u32 %v1249_v34, %v1064_v33 }
  0x50   :  { %735 = vmatpush.bf16.msra.mxu0 %v1145_v43  ;;  %v813_v43 = vor.u32 %v1183_v35, %v810_v37 }
  0x51   :  { %748 = vmatpush.bf16.msra.mxu1 %v893_v44  ;;  %v941_v44 = vor.u32 %v1215_v38, %v938_v39 }
  0x52   :  { %761 = vmatpush.bf16.msra.mxu2 %v1021_v45  ;;  %774 = vmatpush.bf16.msra.mxu3 %v1149_v49  ;;  %v1069_v45 = vor.u32 %v1247_v40, %v1066_v41 }
  0x54   :  { %736 = vmatpush.bf16.msra.mxu0 %v1129_v55 }
  0x55   :  { %749 = vmatpush.bf16.msra.mxu1 %v877_v56 }
  0x56   :  { %762 = vmatpush.bf16.msra.mxu2 %v1005_v57  ;;  %775 = vmatpush.bf16.msra.mxu3 %v1133_v61  ;;  %v131_v57 = vperm.slane %v128_v52, 1 }
  0x58   :  { %737 = vmatpush.bf16.msra.mxu0 %v1113_v5 }
  0x59   :  { %750 = vmatpush.bf16.msra.mxu1 %v861_v6 }
  0x5a   :  { %763 = vmatpush.bf16.msra.mxu2 %v989_v7  ;;  %776 = vmatpush.bf16.msra.mxu3 %v1117_v11  ;;  %v133_v11 = vperm.slane %v128_v52, 3 }
  0x5c   :  { %738 = vmatpush.bf16.msra.mxu0 %v1097_v18 }
  0x5d   :  { %751 = vmatpush.bf16.msra.mxu1 %v845_v19 }
  0x5e   :  { %764 = vmatpush.bf16.msra.mxu2 %v973_v20  ;;  %777 = vmatpush.bf16.msra.mxu3 %v1101_v24 }
  0x60   :  { %739 = vmatpush.bf16.msra.mxu0 %v1081_v30 }
  0x61   :  { %752 = vmatpush.bf16.msra.mxu1 %v829_v31 }
  0x62   :  { %765 = vmatpush.bf16.msra.mxu2 %v957_v32  ;;  %778 = vmatpush.bf16.msra.mxu3 %v1085_v36 }
  0x64   :  { %740 = vmatpush.bf16.msra.mxu0 %v1065_v42 }
  0x65   :  { %753 = vmatpush.bf16.msra.mxu1 %v813_v43 }
  0x66   :  { %766 = vmatpush.bf16.msra.mxu2 %v941_v44  ;;  %779 = vmatpush.bf16.msra.mxu3 %v1069_v45 }
  0x67   :  { %741 = vmatmul.bf16.vlgmr.msra.gmra.mxu0 %v1344_v13 }
  0x68   :  { %754 = vmatmul.bf16.vlgmr.msra.gmra.mxu1 %v1336_v1 }
  0x69   :  { %767 = vmatmul.bf16.vlgmr.msra.gmra.mxu2 %v1338_v2  ;;  %780 = vmatmul.bf16.vlgmr.msra.gmra.mxu3 %v1344_v13 }
  0xa4   :  { %v638_v47 = vpop.f32.mrf.mxu0 }
  0xa5   :  { %v651_v46 = vpop.f32.mrf.mxu1  ;;  %v639_v56 = vadd.f32 %v638_v47, %v130_v53 }
  0xa7   :  { %v652_v1 = vadd.f32 %v651_v46, %v639_v56 }
  0xac   :  { %v664_v49 = vpop.f32.mrf.mxu2  ;;  %v640_v51 = vpop.f32.mrf.mxu0 }
  0xad   :  { %v653_v48 = vpop.f32.mrf.mxu1  ;;  %v665_v2 = vadd.f32 %v664_v49, %v652_v1 }
  0xae   :  { %v677_v50 = vpop.f32.mrf.mxu3 }
  0xaf   :  { %v678_v58 = vadd.f32 %v677_v50, %v131_v57  ;;  %v785_v61 = vmax.f32 %v665_v2, 0.0 }
  0xb4   :  { %v666_v54 = vpop.f32.mrf.mxu2 }
  0xb6   :  { %v679_v55 = vpop.f32.mrf.mxu3 }
  0xc4   :  { %v690_v59 = vpop.f32.mrf.mxu0 }
  0xc5   :  { %v691_v13 = vadd.f32 %v690_v59, %v678_v58  ;;  %v703_v60 = vpop.f32.mrf.mxu1 }
  0xc7   :  { %v704_v62 = vadd.f32 %v703_v60, %v691_v13 }
  0xc9   :  { %v786_v63 = vmax.f32 %v704_v62, 0.0 }
  0xcb   :  { %v789_v0 = vpack.c.bf16 %v786_v63, %v785_v61 }
  0xcc   :  { %v716_v3 = vpop.f32.mrf.mxu2  ;;  %v692_v5 = vpop.f32.mrf.mxu0 }
  0xcd   :  { %791 = vst [vmem:[%s1369_s3] sm:$0xff] %v789_v0  ;;  %v705_v6 = vpop.f32.mrf.mxu1  ;;  %v717_v14 = vadd.f32 %v716_v3, %v132_v9 }
  0xce   :  { %v729_v4 = vpop.f32.mrf.mxu3 }
  0xcf   :  { %v730_v16 = vadd.f32 %v729_v4, %v717_v14 }
  0xd4   :  { %v718_v7 = vpop.f32.mrf.mxu2 }
  0xd6   :  { %v731_v8 = vpop.f32.mrf.mxu3 }
  0xe4   :  { %v742_v10 = vpop.f32.mrf.mxu0 }
  0xe5   :  { %v755_v12 = vpop.f32.mrf.mxu1  ;;  %v743_v18 = vadd.f32 %v742_v10, %v730_v16 }
  0xe6   :  { %v756_v15 = vadd.f32 %v755_v12, %v133_v11 }
  0xe7   :  { %v787_v24 = vmax.f32 %v743_v18, 0.0 }
  0xec   :  { %v768_v17 = vpop.f32.mrf.mxu2  ;;  %v781_v20 = vpop.f32.mrf.mxu3 }
  0xed   :  { %v769_v19 = vadd.f32 %v768_v17, %v756_v15  ;;  %v744_v21 = vpop.f32.mrf.mxu0  ;;  %v757_v22 = vpop.f32.mrf.mxu1 }
  0xef   :  { %v782_v23 = vadd.f32 %v781_v20, %v769_v19 }
  0xf1   :  { %v788_v25 = vmax.f32 %v782_v23, 0.0 }
  0xf3   :  { %v790_v26 = vpack.c.bf16 %v788_v25, %v787_v24 }
  0xf4   :  { %v770_v27 = vpop.f32.mrf.mxu2  ;;  %v783_v28 = vpop.f32.mrf.mxu3 }
  0xf5   :  { %792 = vst [vmem:[%s1369_s3 + $0x8] sm:$0xff] %v790_v26 }
  0xf6   :  { %797 = vsyncpa [#allocation3], 1 }

</bundles_post_ra>
